<compile_context>
chip_gen: v7x
topology: tpu7x:2x2x1
jax: 0.10.0
libtpu: 0.0.40
codegen_flags: <defaults>
</compile_context>

<pallas_src>
import functools

import jax
import jax.numpy as jnp
from jax.experimental import pallas as pl
from jax.experimental.pallas import tpu as pltpu


def _conv_stats_kernel(x_ref, w_ref, y_ref, sum_ref, ssd_ref, *,
                       KH, KW, S, OH, OW, C, OC):
    """One padded NHWC image -> conv output (OHW, OC layout) + BN partials.

    x_ref  : (1, HP, WP, C)     padded image (mxu_dtype)
    w_ref  : (KH*KW*C, OC)      folded weight matrix (mxu_dtype)
    y_ref  : (1, OH*OW, OC)     conv output (f32, accumulator layout)
    sum_ref: (1, 1, OC)         per-image sum over OH*OW
    ssd_ref: (1, 1, OC)         per-image centered sum of squares
    """
    xblk = x_ref[0]                                     # (HP, WP, C) in VMEM
    patches = []
    for kh in range(KH):                                # static KH*KW unroll
        for kw in range(KW):
            if S == 1:
                p = jax.lax.slice(xblk, (kh, kw, 0), (kh + OH, kw + OW, C))
            else:
                # TODO(synk): strided in-kernel slice for S > 1 is untested on
                # Mosaic; if rejected, space-to-batch decompose in the wrapper.
                p = jax.lax.slice(
                    xblk, (kh, kw, 0),
                    (kh + S * (OH - 1) + 1, kw + S * (OW - 1) + 1, C),
                    (S, S, 1))
            patches.append(p.reshape(OH * OW, C))
    # One lane-concat + ONE MXU matmul with K = KH*KW*C (instead of KH*KW
    # matmuls with K = C); f32 accumulation via preferred_element_type.
    cols = jnp.concatenate(patches, axis=-1)            # (OH*OW, KH*KW*C)
    acc = jnp.dot(cols, w_ref[...], preferred_element_type=jnp.float32)

    # Per-image BN partials (combined across images in the XLA epilogue with
    # Chan's parallel-variance formula -- avoids E[x^2]-E[x]^2 cancellation).
    s = jnp.sum(acc, axis=0, keepdims=True)             # (1, OC)
    mu = s * (1.0 / (OH * OW))
    d = acc - mu
    ssd = jnp.sum(d * d, axis=0, keepdims=True)         # (1, OC)
    sum_ref[...] = s.reshape(1, 1, OC)
    ssd_ref[...] = ssd.reshape(1, 1, OC)

    # Store straight from the accumulator -- no transpose in the MXU kernel.
    y_ref[...] = acc.reshape(1, OH * OW, OC)


def _bn_relu_kernel(y_ref, scale_ref, shift_ref, o_ref):
    """Per-channel affine + ReLU, plus the one-off channel-major relayout.

    y_ref : (1, OH*OW, OC) f32; scale/shift: (1, OC); o_ref: (1, OC, OH*OW).
    """
    y = y_ref[0]                                        # (OHW, OC)
    yh = jnp.maximum(y * scale_ref[...] + shift_ref[...], 0.0)
    ohw, oc = yh.shape
    # Transpose lives here (no MXU in this kernel -> XLU slot is free) and the
    # store becomes lane-dense (lanes = OH*OW); final NCHW is a free reshape.
    o_ref[...] = yh.T.reshape(1, oc, ohw)


def _vmem_limit(*nbytes):
    # Double-buffered blocks + in-kernel temporaries, with generous margin.
    need = 4 * 2 * sum(nbytes)
    return int(min(128 * 1024 * 1024, max(16 * 1024 * 1024, need)))


def cba_forward(x, weight, bias, gamma, beta, *, stride, padding,
                eps=1e-5, mxu_dtype=jnp.bfloat16):
    # Conv bias is exactly absorbed by the training-mode BN batch mean.
    del bias

    N, C, H, W = x.shape
    OC, _, KH, KW = weight.shape
    S, P = stride, padding
    OH = (H + 2 * P - KH) // S + 1
    OW = (W + 2 * P - KW) // S + 1
    OHW = OH * OW
    HP, WP = H + 2 * P, W + 2 * P
    esize = jnp.dtype(mxu_dtype).itemsize

    # NCHW -> NHWC (channels on lanes for the contraction) + spatial zero-pad.
    xp = jnp.pad(jnp.transpose(x, (0, 2, 3, 1)),
                 ((0, 0), (P, P), (P, P), (0, 0))).astype(mxu_dtype)
    # (OC, C, KH, KW) -> (KH*KW*C, OC) folded weight; row order (kh, kw, c)
    # matches the in-kernel patch concatenation order.
    w2 = jnp.transpose(weight, (2, 3, 1, 0)).reshape(KH * KW * C, OC)
    w2 = w2.astype(mxu_dtype)

    kernel1 = functools.partial(_conv_stats_kernel, KH=KH, KW=KW, S=S,
                                OH=OH, OW=OW, C=C, OC=OC)

    vmem1 = _vmem_limit(HP * WP * C * esize, KH * KW * C * OC * esize,
                        OHW * OC * 4, OHW * KH * KW * C * esize, 2 * OC * 4)

    # ---- kernel 1: fused conv (folded-K matmul) + per-image BN partials ----
    y, psum, pssd = pl.pallas_call(
        kernel1,
        out_shape=(
            jax.ShapeDtypeStruct((N, OHW, OC), jnp.float32),
            jax.ShapeDtypeStruct((N, 1, OC), jnp.float32),
            jax.ShapeDtypeStruct((N, 1, OC), jnp.float32),
        ),
        grid=(N,),
        in_specs=[
            pl.BlockSpec((1, HP, WP, C), lambda n: (n, 0, 0, 0)),
            pl.BlockSpec((KH * KW * C, OC), lambda n: (0, 0)),
        ],
        out_specs=(
            pl.BlockSpec((1, OHW, OC), lambda n: (n, 0, 0)),
            pl.BlockSpec((1, 1, OC), lambda n: (n, 0, 0)),
            pl.BlockSpec((1, 1, OC), lambda n: (n, 0, 0)),
        ),
        compiler_params=pltpu.CompilerParams(
            dimension_semantics=("parallel",),
            vmem_limit_bytes=vmem1),
    )(xp, w2)

    # ---- BN (training mode): combine per-image partials (Chan's formula) ----
    M_img = float(OHW)
    M_tot = float(N * OHW)
    s = psum.reshape(N, OC)
    d = pssd.reshape(N, OC)
    mean_i = s / M_img
    mean = jnp.sum(s, axis=0) / M_tot
    var = (jnp.sum(d, axis=0)
           + M_img * jnp.sum((mean_i - mean) ** 2, axis=0)) / M_tot
    var = jnp.maximum(var, 0.0)                 # biased var, like PyTorch BN
    inv_std = gamma / jnp.sqrt(var + eps)
    scale = inv_std.reshape(1, OC).astype(jnp.float32)
    shift = (beta - mean * inv_std).reshape(1, OC).astype(jnp.float32)

    vmem2 = _vmem_limit(OHW * OC * 4, OHW * OC * 4, 2 * OC * 4)

    # ---- kernel 2: scale/shift + ReLU + channel-major relayout ----
    out = pl.pallas_call(
        _bn_relu_kernel,
        out_shape=jax.ShapeDtypeStruct((N, OC, OHW), jnp.float32),
        grid=(N,),
        in_specs=[
            pl.BlockSpec((1, OHW, OC), lambda n: (n, 0, 0)),
            pl.BlockSpec((1, OC), lambda n: (0, 0)),
            pl.BlockSpec((1, OC), lambda n: (0, 0)),
        ],
        out_specs=pl.BlockSpec((1, OC, OHW), lambda n: (n, 0, 0)),
        compiler_params=pltpu.CompilerParams(
            dimension_semantics=("parallel",),
            vmem_limit_bytes=vmem2),
    )(y, scale, shift)

    # Channel-major layout makes NCHW a free metadata reshape (no transpose).
    return out.reshape(N, OC, OH, OW)


def _reference(x, weight, bias, gamma, beta, *, stride, padding, eps=1e-5):
    y = jax.lax.conv_general_dilated(
        x, weight, window_strides=(stride, stride),
        padding=[(padding, padding), (padding, padding)],
        dimension_numbers=("NCHW", "OIHW", "NCHW"))
    y = y + bias.reshape(1, -1, 1, 1)
    mean = y.mean(axis=(0, 2, 3), keepdims=True)
    var = y.var(axis=(0, 2, 3), keepdims=True)  # biased, like PyTorch BN
    yh = (y - mean) / jnp.sqrt(var + eps)
    yh = yh * gamma.reshape(1, -1, 1, 1) + beta.reshape(1, -1, 1, 1)
    return jnp.maximum(yh, 0.0)


if __name__ == "__main__":
    # NCHW input, Conv2d(C_in=4 -> C_out=8, k=3, s=1, p=1) + BN + ReLU
    N, C_in, H, W = 2, 4, 16, 16
    C_out, KH, KW = 8, 3, 3
    stride, padding = 1, 1

    key = jax.random.PRNGKey(0)
    kx, kw, kb = jax.random.split(key, 3)
    x = jax.random.normal(kx, (N, C_in, H, W), dtype=jnp.float32)
    weight = 0.1 * jax.random.normal(kw, (C_out, C_in, KH, KW), dtype=jnp.float32)
    bias = 0.1 * jax.random.normal(kb, (C_out,), dtype=jnp.float32)
    gamma = jnp.ones((C_out,), dtype=jnp.float32)   # BN weight init
    beta = jnp.zeros((C_out,), dtype=jnp.float32)   # BN bias init

    out = cba_forward(x, weight, bias, gamma, beta,
                      stride=stride, padding=padding)
    out = jax.block_until_ready(out)

    ref = _reference(x, weight, bias, gamma, beta,
                     stride=stride, padding=padding)
    assert out.shape == (N, C_out, H, W)
    # bf16 MXU operands (f32 accumulate) -> relaxed tolerance.  Passing
    # mxu_dtype=jnp.float32 to cba_forward passes rtol=1e-3, atol=1e-4.
    assert jnp.allclose(out, ref, rtol=2e-2, atol=2e-2), "mismatch vs reference"

    print("KERNEL_OK")
</pallas_src>

<mosaic_0001>
module attributes {stable_mosaic.version = 11 : i64} {
  func.func @_conv_stats_kernel(%arg0: i32, %arg1: memref<1x18x18x4xbf16, #tpu.memory_space<vmem>>, %arg2: memref<36x8xbf16, #tpu.memory_space<vmem>>, %arg3: memref<1x256x8xf32, #tpu.memory_space<vmem>>, %arg4: memref<1x1x8xf32, #tpu.memory_space<vmem>>, %arg5: memref<1x1x8xf32, #tpu.memory_space<vmem>>) attributes {dimension_semantics = [#tpu.dimension_semantics<parallel>], iteration_bounds = array<i64: 2>, scalar_prefetch = 0 : i64, scratch_operands = 0 : i64, tpu.core_type = #tpu.core_type<tc>, window_params = [{transform_indices = @transform_0, window_bounds = array<i64: 1, 18, 18, 4>}, {pipeline_mode = #tpu.pipeline_mode<synchronous>, transform_indices = @transform_1, window_bounds = array<i64: 36, 8>}, {transform_indices = @transform_2, window_bounds = array<i64: 1, 256, 8>}, {transform_indices = @transform_3, window_bounds = array<i64: 1, 1, 8>}, {transform_indices = @transform_4, window_bounds = array<i64: 1, 1, 8>}]} {
    %c0 = arith.constant 0 : index
    %c0_0 = arith.constant 0 : index
    %c0_1 = arith.constant 0 : index
    %c0_2 = arith.constant 0 : index
    %0 = vector.load %arg1[%c0, %c0_0, %c0_1, %c0_2] : memref<1x18x18x4xbf16, #tpu.memory_space<vmem>>, vector<1x18x18x4xbf16>
    %1 = vector.shape_cast %0 : vector<1x18x18x4xbf16> to vector<18x18x4xbf16>
    %2 = vector.extract_strided_slice %1 {offsets = [0, 0, 0], sizes = [16, 16, 4], strides = [1, 1, 1]} : vector<18x18x4xbf16> to vector<16x16x4xbf16>
    %3 = vector.shape_cast %2 : vector<16x16x4xbf16> to vector<256x4xbf16>
    %4 = vector.extract_strided_slice %1 {offsets = [0, 1, 0], sizes = [16, 16, 4], strides = [1, 1, 1]} : vector<18x18x4xbf16> to vector<16x16x4xbf16>
    %5 = vector.shape_cast %4 : vector<16x16x4xbf16> to vector<256x4xbf16>
    %6 = vector.extract_strided_slice %1 {offsets = [0, 2, 0], sizes = [16, 16, 4], strides = [1, 1, 1]} : vector<18x18x4xbf16> to vector<16x16x4xbf16>
    %7 = vector.shape_cast %6 : vector<16x16x4xbf16> to vector<256x4xbf16>
    %8 = vector.extract_strided_slice %1 {offsets = [1, 0, 0], sizes = [16, 16, 4], strides = [1, 1, 1]} : vector<18x18x4xbf16> to vector<16x16x4xbf16>
    %9 = vector.shape_cast %8 : vector<16x16x4xbf16> to vector<256x4xbf16>
    %10 = vector.extract_strided_slice %1 {offsets = [1, 1, 0], sizes = [16, 16, 4], strides = [1, 1, 1]} : vector<18x18x4xbf16> to vector<16x16x4xbf16>
    %11 = vector.shape_cast %10 : vector<16x16x4xbf16> to vector<256x4xbf16>
    %12 = vector.extract_strided_slice %1 {offsets = [1, 2, 0], sizes = [16, 16, 4], strides = [1, 1, 1]} : vector<18x18x4xbf16> to vector<16x16x4xbf16>
    %13 = vector.shape_cast %12 : vector<16x16x4xbf16> to vector<256x4xbf16>
    %14 = vector.extract_strided_slice %1 {offsets = [2, 0, 0], sizes = [16, 16, 4], strides = [1, 1, 1]} : vector<18x18x4xbf16> to vector<16x16x4xbf16>
    %15 = vector.shape_cast %14 : vector<16x16x4xbf16> to vector<256x4xbf16>
    %16 = vector.extract_strided_slice %1 {offsets = [2, 1, 0], sizes = [16, 16, 4], strides = [1, 1, 1]} : vector<18x18x4xbf16> to vector<16x16x4xbf16>
    %17 = vector.shape_cast %16 : vector<16x16x4xbf16> to vector<256x4xbf16>
    %18 = vector.extract_strided_slice %1 {offsets = [2, 2, 0], sizes = [16, 16, 4], strides = [1, 1, 1]} : vector<18x18x4xbf16> to vector<16x16x4xbf16>
    %19 = vector.shape_cast %18 : vector<16x16x4xbf16> to vector<256x4xbf16>
    %20 = tpu.concatenate %3, %5, %7, %9, %11, %13, %15, %17, %19 in 1 : vector<256x4xbf16>, vector<256x4xbf16>, vector<256x4xbf16>, vector<256x4xbf16>, vector<256x4xbf16>, vector<256x4xbf16>, vector<256x4xbf16>, vector<256x4xbf16>, vector<256x4xbf16> -> vector<256x36xbf16>
    %c0_3 = arith.constant 0 : index
    %c0_4 = arith.constant 0 : index
    %21 = vector.load %arg2[%c0_3, %c0_4] : memref<36x8xbf16, #tpu.memory_space<vmem>>, vector<36x8xbf16>
    %cst = arith.constant dense<0.000000e+00> : vector<256x8xf32>
    %22 = tpu.matmul %20, %21, %cst {dimension_numbers = #tpu.dot_dimension_numbers<[1], [0], [0], [1], [0, 0, 1, 1], [], []>} : vector<256x36xbf16>, vector<36x8xbf16>, vector<256x8xf32> -> vector<256x8xf32>
    %cst_5 = arith.constant dense<0.000000e+00> : vector<8xf32>
    %23 = vector.multi_reduction <add>, %22, %cst_5 [0] : vector<256x8xf32> to vector<8xf32>
    %24 = vector.shape_cast %23 : vector<8xf32> to vector<1x8xf32>
    %cst_6 = arith.constant 3.906250e-03 : f32
    %25 = vector.broadcast %cst_6 : f32 to vector<1x8xf32>
    %26 = arith.mulf %24, %25 : vector<1x8xf32>
    %27 = vector.broadcast %26 : vector<1x8xf32> to vector<256x8xf32>
    %28 = arith.subf %22, %27 : vector<256x8xf32>
    %29 = arith.mulf %28, %28 : vector<256x8xf32>
    %cst_7 = arith.constant dense<0.000000e+00> : vector<8xf32>
    %30 = vector.multi_reduction <add>, %29, %cst_7 [0] : vector<256x8xf32> to vector<8xf32>
    %31 = vector.shape_cast %30 : vector<8xf32> to vector<1x8xf32>
    %32 = vector.shape_cast %24 : vector<1x8xf32> to vector<1x1x8xf32>
    %c0_8 = arith.constant 0 : index
    %c0_9 = arith.constant 0 : index
    %c0_10 = arith.constant 0 : index
    %33 = vector.load %arg4[%c0_8, %c0_9, %c0_10] : memref<1x1x8xf32, #tpu.memory_space<vmem>>, vector<1x1x8xf32>
    tpu.vector_store %arg4[%c0_8, %c0_9, %c0_10], %32 {strides = array<i32>} : memref<1x1x8xf32, #tpu.memory_space<vmem>>, vector<1x1x8xf32>,
    %34 = vector.shape_cast %31 : vector<1x8xf32> to vector<1x1x8xf32>
    %c0_11 = arith.constant 0 : index
    %c0_12 = arith.constant 0 : index
    %c0_13 = arith.constant 0 : index
    %35 = vector.load %arg5[%c0_11, %c0_12, %c0_13] : memref<1x1x8xf32, #tpu.memory_space<vmem>>, vector<1x1x8xf32>
    tpu.vector_store %arg5[%c0_11, %c0_12, %c0_13], %34 {strides = array<i32>} : memref<1x1x8xf32, #tpu.memory_space<vmem>>, vector<1x1x8xf32>,
    %36 = vector.shape_cast %22 : vector<256x8xf32> to vector<1x256x8xf32>
    %c0_14 = arith.constant 0 : index
    %c0_15 = arith.constant 0 : index
    %c0_16 = arith.constant 0 : index
    %37 = vector.load %arg3[%c0_14, %c0_15, %c0_16] : memref<1x256x8xf32, #tpu.memory_space<vmem>>, vector<1x256x8xf32>
    tpu.vector_store %arg3[%c0_14, %c0_15, %c0_16], %36 {strides = array<i32>} : memref<1x256x8xf32, #tpu.memory_space<vmem>>, vector<1x256x8xf32>,
    return
  }
  func.func @transform_0(%arg0: i32) -> (i32, i32, i32, i32) {
    %c0_i32 = arith.constant 0 : i32
    %c0_i32_0 = arith.constant 0 : i32
    %c0_i32_1 = arith.constant 0 : i32
    %c0_i32_2 = arith.constant 0 : i32
    return %arg0, %c0_i32, %c0_i32_0, %c0_i32_1 : i32, i32, i32, i32
  }
  func.func @transform_1(%arg0: i32) -> (i32, i32) {
    %c0_i32 = arith.constant 0 : i32
    %c0_i32_0 = arith.constant 0 : i32
    %c0_i32_1 = arith.constant 0 : i32
    return %c0_i32, %c0_i32_0 : i32, i32
  }
  func.func @transform_2(%arg0: i32) -> (i32, i32, i32) {
    %c0_i32 = arith.constant 0 : i32
    %c0_i32_0 = arith.constant 0 : i32
    %c0_i32_1 = arith.constant 0 : i32
    return %arg0, %c0_i32, %c0_i32_0 : i32, i32, i32
  }
  func.func @transform_3(%arg0: i32) -> (i32, i32, i32) {
    %c0_i32 = arith.constant 0 : i32
    %c0_i32_0 = arith.constant 0 : i32
    %c0_i32_1 = arith.constant 0 : i32
    return %arg0, %c0_i32, %c0_i32_0 : i32, i32, i32
  }
  func.func @transform_4(%arg0: i32) -> (i32, i32, i32) {
    %c0_i32 = arith.constant 0 : i32
    %c0_i32_0 = arith.constant 0 : i32
    %c0_i32_1 = arith.constant 0 : i32
    return %arg0, %c0_i32, %c0_i32_0 : i32, i32, i32
  }
}

</mosaic_0001>

<bundles_post_ra>
// kernel: tpu_custom_call.1
= control target key start
LH: loop header
LB: loop body
LE: loop exit
PB: predicated region body
PF: predicated region fallthrough
CT: control target
= control target key end

     0   :  { %10 = vsyncpa [#allocation3], 0  ;;  %s3928_s0 = inlined_call_operand.vmem [shape: bf16[2,18,18,4], index: 0, kind: input, shape index: {}]   ;;  %s3929_s1 = inlined_call_operand.vmem [shape: bf16[36,8], index: 1, kind: input, shape index: {}]   ;;  %s3930_s2 = inlined_call_operand.vmem [shape: f32[2,256,8], index: 2, kind: output, shape index: {0}]   ;;  %s3931_s3 = inlined_call_operand.hbm [shape: f32[2,1,8], index: 3, kind: output, shape index: {1}]   ;;  %s3932_s4 = inlined_call_operand.hbm [shape: f32[2,1,8], index: 4, kind: output, shape index: {2}]  }
   0x1   :  { %12 = vsyncpa [#allocation3 + $0x1], 0 }
   0x2   :  { %13 = vsyncpa [#allocation5], 0 }
   0x3   :  { %15 = vsyncpa [#allocation5 + $0x1], 0  ;;  %s2563_s15 = smov 0   ;;  %s2565_s16 = smov 0  }
   0x4   :  { %s2567_s17 = smov 0   ;;  %s2569_s18 = smov 0  }
   0x5 LB: > { %s2584_s19 = sadd.s32 4294967295, %s2526_s18   ;;  %s2190_s20 = sadd.s32 4294967294, %s2526_s18   ;;  %s2526_s18 = sphi %s2569_s18, %s3942_s18   ;;  %s2522_s17 = sphi %s2567_s17, %s3941_s17   ;;  %s2518_s16 = sphi %s2565_s16, %s3940_s16   ;;  %s2514_s15 = sphi %s2563_s15, %s3939_s15  }
   0x6   : > { %s2588_s21 = sadd.s32 1, %s2526_s18   ;;  %s101_s22 = sadd.s32 1, %s2522_s17 }
   0x7   : > { %s98_s23 = ssub.s32 %s2526_s18, %s2588_s21  ;;  %p111_p0 = scmp.ne.s32.totalorder %s2522_s17, %s2518_s16 }
   0x8   : > { %p99_p1 = scmp.eq.s32.totalorder %s98_s23, 0  ;;  %p112_p2 = scmp.eq.s32.totalorder %s2584_s19, 1 }
   0x9   : > { %p117_p3 = scmp.ne.s32.totalorder %s2518_s16, %s2514_s15  ;;  %p118_p4 = scmp.eq.s32.totalorder %s2190_s20, 1 }
   0xa   : > { %s2599_s24 = scalar_select %p99_p1, %s2522_s17, %s101_s22  }
   0xb   : > { %p2601_p5 = por %p112_p2, %p111_p0  ;;  %p2605_p6 = por %p118_p4, %p117_p3 }
   0xc   : > { %p2193_p7 = scmp.ge.s32.totalorder %s2526_s18, 1  ;;  %p173_p8 = scmp.lt.s32.totalorder %s2526_s18, 3 }
   0xe   : > { %p174_p9 = pnand %p2193_p7, %p173_p8 }
   0xf   : > { %p207_p10 = scmp.lt.s32.totalorder (!%p174_p9), %s2584_s19, 1  ;;  %vm707_vm0 = vcmask (!%p174_p9), 1042432   ;;  %vm708_vm1 = vcmask (!%p174_p9), 1046532   ;;  %vm272_vm2 = vsmask.f32 (!%p174_p9), 3328  ;;  %s2528_s6 = smov (!%p174_p9), 12  }
  0x10   : > { %177 = sbr.rel (%p174_p9) target bundleno = 753 (0x2f1), region = 28  ;;  %vm273_vm3 = vsmask.f32 (!%p174_p9), 7440  ;;  %vm2641_vm4 = vmor (!%p174_p9), %vm707_vm0, %vm708_vm1  ;;  %s2529_s7 = smov (!%p174_p9), 20   ;;  %vm1641_vm6 = vcmask (!%p174_p9), 1041408   ;;  %vm1308_vm7 = vcmask (!%p174_p9), 31744  }
  0x11   : > { %vm2676_vm5 = vmor (!%p174_p9), %vm272_vm2, %vm273_vm3  ;;  %s2530_s8 = smov (!%p174_p9), 8   ;;  %s2531_s9 = smov (!%p174_p9), 4   ;;  %vm1357_vm8 = vcmask (!%p174_p9), 64512   ;;  %vm1390_vm9 = vcmask (!%p174_p9), 97280   ;;  %vm1423_vm10 = vcmask (!%p174_p9), 130048   ;;  %vm1456_vm11 = vcmask (!%p174_p9), 162816  }
  0x12   : > { %s2532_s14 = smov (!%p174_p9), 16   ;;  %s2533_s20 = smov (!%p174_p9), 24   ;;  %vm1489_vm12 = vcmask (!%p174_p9), 195584   ;;  %vm1522_vm13 = vcmask (!%p174_p9), 228352   ;;  %vm1555_vm14 = vcmask (!%p174_p9), 261120   ;;  %vm1608_vm15 = vcmask (!%p174_p9), 293888  }
  0x13   : > { %s2534_s22 = smov (!%p174_p9), 28   ;;  %s2535_s23 = smov (!%p174_p9), 32   ;;  %vm2009_vm0 = vcmask (!%p174_p9), 57344  }
  0x17   : > { %s2613_s27 = scalar_select %p207_p10, %s2584_s19, 1 }
  0x19   : > { %s2358_s28 = smul.u32 216, %s2613_s27  ;;  %s2292_s30 = sshll.u32 %s2613_s27, 8 }
  0x1a   : > { %s3722_s27 = sand.u32 1, %s2518_s16  }
  0x1b   : > { %s2619_s5 = scalar_lea.vmem %s3928_s0, %s2358_s28 }
  0x1c   : > { %v2622_v0 = vld [vmem:[%s2619_s5 + $0x18] sm:$0xf]  ;;  %v2625_v1 = vld [vmem:[%s2619_s5 + $0x1c] sm:$0xf]  ;;  %v221_v2 = vld [vmem:[%s2619_s5 + $0xc] sm:$0xf] }
  0x1d   : > { %v337_v3 = vshrl.u32 %v2625_v1, 16  ;;  %v2631_v4 = vcombine.low %v2622_v0, %v2625_v1  ;;  %v324_v5 = vshrl.u32 %v2622_v0, 16  ;;  %v327_v6 = vshll.u32 %v2622_v0, 16  ;;  %v222_v7 = vld [vmem:[%s2619_s5 + $0x10] sm:$0xf] }
  0x1e   : > { %v309_v8 = vshll.u32 %v222_v7, 16  ;;  %v313_v9 = vshrl.u32 %v222_v7, 16  ;;  %v2636_v10 = vcombine.low %v221_v2, %v222_v7  ;;  %v300_v11 = vshrl.u32 %v221_v2, 16  ;;  %v223_v12 = vld [vmem:[%s2619_s5 + $0x14] sm:$0x1] }
  0x1f   : > { %1103 = vrot.lane.b32.xlu1 %v2631_v4, %s2528_s6  ;;  %v303_v14 = vshll.u32 %v221_v2, 16  ;;  %v2198_v15 = vrot.slane %v221_v2, 9  ;;  %v719_v16 = vrot.slane %v222_v7, 5  ;;  %v722_v17 = vrot.slane %v223_v12, 5  ;;  %v2648_v18 = vld [vmem:[%s2619_s5] sm:$0xf] }
  0x20   : > { %v315_v19 = vrot.slane %v313_v9, 4  ;;  %1101 = vrot.lane.b32.xlu0 %v2636_v10, %s2528_s6  ;;  %v302_v20 = vrot.slane %v300_v11, 4  ;;  %v2653_v21 = vld [vmem:[%s2619_s5 + $0x4] sm:$0xf]  ;;  %v220_v22 = vld [vmem:[%s2619_s5 + $0x8] sm:$0x1] }
  0x21   : > { %v305_v23 = vrot.slane %v303_v14, 5  ;;  %v720_v24 = vsel %vm2641_vm4, %v2198_v15, %v719_v16  ;;  %v721_v25 = vrot.slane %v719_v16, 4  ;;  %v2197_v26 = vrot.slane %v2648_v18, 9  ;;  %v226_v35 = vld [vmem:[%s2619_s5 + $0x20] sm:$0x1] }
  0x22   : > { %v712_v27 = vrot.slane %v2653_v21, 5  ;;  %v715_v28 = vrot.slane %v220_v22, 5  ;;  %v276_v29 = vshrl.u32 %v2648_v18, 16  ;;  %v279_v30 = vshll.u32 %v2648_v18, 16  ;;  %v2690_v7 = vld [vmem:[%s2619_s5 + $0x24] sm:$0xf] }
  0x23   : > { %v723_v31 = vsel %vm2641_vm4, %v721_v25, %v722_v17  ;;  %v285_v32 = vshll.u32 %v2653_v21, 16  ;;  %v289_v33 = vshrl.u32 %v2653_v21, 16  ;;  %v295_v34 = vshll.u32 %v220_v22, 16 }
  0x24   : > { %v2248_v36 = vcombine.low %v720_v24, %v723_v31  ;;  %v713_v37 = vsel %vm2641_vm4, %v2197_v26, %v712_v27  ;;  %v714_v38 = vrot.slane %v712_v27, 4  ;;  %v278_v39 = vrot.slane %v276_v29, 4  ;;  %v229_v26 = vld [vmem:[%s2619_s5 + $0x2c] sm:$0x1] }
  0x25   : > { %v281_v40 = vrot.slane %v279_v30, 5  ;;  %v287_v41 = vrot.slane %v285_v32, 5  ;;  %v291_v42 = vrot.slane %v289_v33, 4  ;;  %v297_v43 = vrot.slane %v295_v34, 5  ;;  %v2423_v34 = vld [vmem:[%s3929_s1 + $0x8] sm:$0xff]  }
  0x26   : > { %1171 = vrot.lane.b32.xlu0 %v2248_v36, %s2529_s7  ;;  %v716_v44 = vsel %vm2641_vm4, %v714_v38, %v715_v28  ;;  %v2199_v45 = vrot.slane %v2622_v0, 9  ;;  %v726_v46 = vrot.slane %v2625_v1, 5  ;;  %v729_v47 = vrot.slane %v226_v35, 5 }
  0x27   : > { %v2247_v48 = vcombine.low %v713_v37, %v716_v44  ;;  %v282_v49 = vor.u32 %v281_v40, %v278_v39  ;;  %v292_v50 = vor.u32 %v291_v42, %v287_v41  ;;  %v306_v51 = vor.u32 %v305_v23, %v302_v20 }
  0x28   : > { %v727_v53 = vsel %vm2641_vm4, %v2199_v45, %v726_v46  ;;  %v728_v54 = vrot.slane %v726_v46, 4  ;;  %v311_v55 = vrot.slane %v309_v8, 5  ;;  %v319_v56 = vshll.u32 %v223_v12, 16  ;;  %v2701_v12 = vld [vmem:[%s2619_s5 + $0x28] sm:$0xf] }
  0x29   : > { %1066 = vrot.lane.b32.xlu1 %v2247_v48, %s2530_s8  ;;  %v283_v57 = vrot.slane %v282_v49, 4  ;;  %v293_v58 = vrot.slane %v292_v50, 4  ;;  %v307_v59 = vrot.slane %v306_v51, 4  ;;  %v326_v60 = vrot.slane %v324_v5, 4  ;;  %v230_v49 = vld [vmem:[%s2619_s5 + $0x30] sm:$0xf] }
  0x2a   : > { %v730_v61 = vsel %vm2641_vm4, %v728_v54, %v729_v47  ;;  %v316_v62 = vor.u32 %v315_v19, %v311_v55  ;;  %v321_v63 = vrot.slane %v319_v56, 5  ;;  %v329_v2 = vrot.slane %v327_v6, 5  ;;  %v231_v50 = vld [vmem:[%s2619_s5 + $0x34] sm:$0xf] }
  0x2b   : > { %v288_v8 = vsel %vm2676_vm5, %v283_v57, %v287_v41  ;;  %v298_v9 = vsel %vm2676_vm5, %v293_v58, %v297_v43  ;;  %v2696_v11 = vcombine.low %v727_v53, %v730_v61  ;;  %v312_v5 = vsel %vm2676_vm5, %v307_v59, %v311_v55 }
  0x2c   : > { %v2231_v14 = vcombine.low %v288_v8, %v298_v9  ;;  %v317_v15 = vrot.slane %v316_v62, 4  ;;  %v330_v0 = vor.u32 %v329_v2, %v326_v60  ;;  %v333_v6 = vshll.u32 %v2625_v1, 16  ;;  %v2421_v1 = vld [vmem:[%s3929_s1] sm:$0xff]   ;;  %v232_v62 = vld [vmem:[%s2619_s5 + $0x38] sm:$0x1] }
  0x2d   : > { %1068 = vrot.lane.b32.xlu1 %v2248_v36, %s2530_s8  ;;  %v339_v16 = vrot.slane %v337_v3, 4  ;;  %v343_v17 = vshll.u32 %v226_v35, 16  ;;  %v348_v19 = vshrl.u32 %v2690_v7, 16  ;;  %v351_v20 = vshll.u32 %v2690_v7, 16  ;;  %2312 = vmatprep.subr.bf16.mxu0 %v2421_v1 }
  0x2e   : > { %986 = vrot.lane.b32.xlu0 %v2231_v14, %s2531_s9  ;;  %v322_v22 = vsel %vm2676_vm5, %v317_v15, %v321_v63  ;;  %v331_v23 = vrot.slane %v330_v0, 4  ;;  %v335_v24 = vrot.slane %v333_v6, 5  ;;  %v361_v25 = vshrl.u32 %v2701_v12, 16  ;;  %2350 = vmatprep.subr.bf16.mxu1 %v2421_v1  ;;  %v2757_v15 = vld [vmem:[%s2619_s5 + $0x3c] sm:$0xf] }
  0x2f   : > { %v2232_v3 = vcombine.low %v312_v5, %v322_v22  ;;  %v350_v27 = vrot.slane %v348_v19, 4  ;;  %v345_v29 = vrot.slane %v343_v17, 5  ;;  %v353_v30 = vrot.slane %v351_v20, 5  ;;  %2313 = vmatpush3.bf16.msra.mxu0 %v2421_v1  ;;  %2353 = vmatpush3.bf16.msra.mxu1 %v2421_v1  ;;  %v234_v0 = vld [vmem:[%s2619_s5 + $0x40] sm:$0xf] }
  0x30   : > { %v340_v28 = vor.u32 %v339_v16, %v335_v24  ;;  %v357_v31 = vshll.u32 %v2701_v12, 16  ;;  %v363_v32 = vrot.slane %v361_v25, 4  ;;  %v367_v33 = vshll.u32 %v229_v26, 16  ;;  %2314 = vmatprep.subr.bf16.mxu0 %v2423_v34  ;;  %2351 = vmatprep.subr.bf16.mxu1 %v2423_v34 }
  0x31   : > { %1173 = vrot.lane.b32.xlu1 %v2696_v11, %s2529_s7  ;;  %v336_v35 = vsel %vm2676_vm5, %v331_v23, %v335_v24  ;;  %v354_v37 = vor.u32 %v353_v30, %v350_v27  ;;  %v2732_v45 = vcombine.low %v2690_v7, %v2701_v12  ;;  %v733_v46 = vrot.slane %v2701_v12, 5 }
  0x32   : > { %988 = vrot.lane.b32.xlu0 %v2232_v3, %s2531_s9  ;;  %v341_v36 = vrot.slane %v340_v28, 4  ;;  %v359_v38 = vrot.slane %v357_v31, 5  ;;  %v369_v42 = vrot.slane %v367_v33, 5  ;;  %v2200_v53 = vrot.slane %v2690_v7, 9  ;;  %v235_v33 = vld [vmem:[%s2619_s5 + $0x44] sm:$0x1] }
  0x33   : > { %v355_v40 = vrot.slane %v354_v37, 4  ;;  %2315 = vmatpush3.bf16.msra.mxu0 %v2423_v34  ;;  %2354 = vmatpush3.bf16.msra.mxu1 %v2423_v34  ;;  %v735_v54 = vrot.slane %v733_v46, 4  ;;  %v736_v55 = vrot.slane %v229_v26, 5  ;;  %v372_v56 = vshrl.u32 %v230_v49, 16 }
  0x34   : > { %v346_v39 = vsel %vm2676_vm5, %v341_v36, %v345_v29  ;;  %v364_v41 = vor.u32 %v363_v32, %v359_v38  ;;  %v375_v57 = vshll.u32 %v230_v49, 16  ;;  %v385_v58 = vshrl.u32 %v231_v50, 16 }
  0x35   : > { %v2233_v43 = vcombine.low %v336_v35, %v346_v39  ;;  %v360_v47 = vsel %vm2676_vm5, %v355_v40, %v359_v38  ;;  %v381_v59 = vshll.u32 %v231_v50, 16  ;;  %v734_v60 = vsel %vm2641_vm4, %v2200_v53, %v733_v46 }
  0x36   : > { %1136 = vrot.lane.b32.xlu0 %v2232_v3, %s2532_s14  ;;  %v365_v44 = vrot.slane %v364_v41, 4  ;;  %v737_v61 = vsel %vm2641_vm4, %v735_v54, %v736_v55  ;;  %v374_v63 = vrot.slane %v372_v56, 4  ;;  %v377_v2 = vrot.slane %v375_v57, 5 }
  0x37   : > { %1138 = vrot.lane.b32.xlu1 %v2233_v43, %s2532_s14  ;;  %v383_v7 = vrot.slane %v381_v59, 5  ;;  %v387_v8 = vrot.slane %v385_v58, 4  ;;  %v2250_v9 = vcombine.low %v734_v60, %v737_v61  ;;  %v391_v5 = vshll.u32 %v232_v62, 16  ;;  %v2424_v60 = vld [vmem:[%s3929_s1 + $0x10] ss:$0 sps:$4 sm:$0x33]  }
  0x38   : > { %v370_v48 = vsel %vm2676_vm5, %v365_v44, %v369_v42  ;;  %v378_v12 = vor.u32 %v377_v2, %v374_v63  ;;  %v740_v16 = vrot.slane %v231_v50, 5  ;;  %v396_v17 = vshrl.u32 %v2757_v15, 16  ;;  %v238_v2 = vld [vmem:[%s2619_s5 + $0x50] sm:$0x1]  ;;  %2356 = vmatprep.subr.msk.bf16.mxu0 %vm1641_vm6, %v2424_v60  ;;  %2357 = vmatprep.subr.msk.bf16.mxu1 %vm1641_vm6, %v2424_v60 }
  0x39   : > { %v2234_v51 = vcombine.low %v360_v47, %v370_v48  ;;  %v388_v14 = vor.u32 %v387_v8, %v383_v7  ;;  %v393_v6 = vrot.slane %v391_v5, 5  ;;  %v399_v19 = vshll.u32 %v2757_v15, 16 }
  0x3a   : > { %1206 = vrot.lane.b32.xlu0 %v2631_v4, %s2533_s20  ;;  %v379_v20 = vrot.slane %v378_v12, 4  ;;  %v409_v23 = vshrl.u32 %v234_v0, 16  ;;  %v405_v24 = vshll.u32 %v234_v0, 16  ;;  %v2766_v25 = vcombine.low %v230_v49, %v231_v50  ;;  %v2799_v50 = vld [vmem:[%s2619_s5 + $0x4c] sm:$0xf] }
  0x3b   : > { %1208 = vrot.lane.b32.xlu1 %v2732_v45, %s2533_s20  ;;  %v389_v22 = vrot.slane %v388_v14, 4  ;;  %v2201_v26 = vrot.slane %v230_v49, 9  ;;  %v742_v1 = vrot.slane %v740_v16, 4  ;;  %v743_v3 = vrot.slane %v232_v62, 5  ;;  %v2796_v49 = vld [vmem:[%s2619_s5 + $0x48] sm:$0xf] }
  0x3c   : > { %v398_v27 = vrot.slane %v396_v17, 4  ;;  %v401_v28 = vrot.slane %v399_v19, 5  ;;  %v384_v29 = vsel %vm2676_vm5, %v379_v20, %v383_v7  ;;  %v407_v31 = vrot.slane %v405_v24, 5 }
  0x3d   : > { %v394_v30 = vsel %vm2676_vm5, %v389_v22, %v393_v6  ;;  %v411_v32 = vrot.slane %v409_v23, 4  ;;  %v741_v34 = vsel %vm2641_vm4, %v2201_v26, %v740_v16  ;;  %v744_v35 = vsel %vm2641_vm4, %v742_v1, %v743_v3  ;;  %v239_v6 = vld [vmem:[%s2619_s5 + $0x54] sm:$0xf]  ;;  %v240_v16 = vld [vmem:[%s2619_s5 + $0x58] sm:$0xf] }
  0x3e   : > { %1241 = vrot.lane.b32.xlu0 %v2233_v43, %s2534_s22  ;;  %v402_v36 = vor.u32 %v401_v28, %v398_v27  ;;  %v415_v38 = vshll.u32 %v235_v33, 16  ;;  %v2251_v39 = vcombine.low %v741_v34, %v744_v35  ;;  %v747_v44 = vrot.slane %v234_v0, 5  ;;  %v241_v35 = vld [vmem:[%s2619_s5 + $0x5c] sm:$0x1] }
  0x3f   : > { %1243 = vrot.lane.b32.xlu1 %v2234_v51, %s2534_s22  ;;  %v412_v37 = vor.u32 %v411_v32, %v407_v31  ;;  %v2215_v46 = vcombine.low %v2648_v18, %v2653_v21  ;;  %v750_v55 = vrot.slane %v235_v33, 5  ;;  %v420_v56 = vshrl.u32 %v2796_v49, 16 }
  0x40   : > { %v403_v40 = vrot.slane %v402_v36, 4  ;;  %v417_v42 = vrot.slane %v415_v38, 5  ;;  %v749_v54 = vrot.slane %v747_v44, 4  ;;  %v423_v57 = vshll.u32 %v2796_v49, 16 }
  0x41   : > { %v413_v41 = vrot.slane %v412_v37, 4  ;;  %v433_v58 = vshrl.u32 %v2799_v50, 16  ;;  %v429_v59 = vshll.u32 %v2799_v50, 16  ;;  %v422_v63 = vrot.slane %v420_v56, 4 }
  0x42   : > { %1276 = vrot.lane.b32.xlu0 %v2696_v11, %s2535_s23  ;;  %v408_v47 = vsel %vm2676_vm5, %v403_v40, %v407_v31  ;;  %v751_v62 = vsel %vm2641_vm4, %v749_v54, %v750_v55  ;;  %v425_v7 = vrot.slane %v423_v57, 5  ;;  %v1643_v12 = vsel %vm1641_vm6, %v2424_v60, 0  ;;  %v243_v55 = vld [vmem:[%s2619_s5 + $0x64] sm:$0xf] }
  0x43   : > { %990 = vrot.lane.b32.xlu1 %v2233_v43, %s2531_s9  ;;  %v2787_v43 = vcombine.low %v2757_v15, %v234_v0  ;;  %v418_v48 = vsel %vm2676_vm5, %v413_v41, %v417_v42  ;;  %v431_v8 = vrot.slane %v429_v59, 5  ;;  %v439_v14 = vshll.u32 %v238_v2, 16  ;;  %2317 = vmatpush3.bf16.msra.mxu0 %v1643_v12 }
  0x44   : > { %v2236_v53 = vcombine.low %v408_v47, %v418_v48  ;;  %2355 = vmatpush3.bf16.msra.mxu1 %v1643_v12  ;;  %v754_v19 = vrot.slane %v2799_v50, 5  ;;  %v444_v20 = vshrl.u32 %v239_v6, 16  ;;  %v447_v22 = vshll.u32 %v239_v6, 16 }
  0x45   : > { %v441_v17 = vrot.slane %v439_v14, 5  ;;  %v457_v26 = vshrl.u32 %v240_v16, 16  ;;  %v453_v1 = vshll.u32 %v240_v16, 16  ;;  %v2830_v3 = vcombine.low %v2796_v49, %v2799_v50 }
  0x46   : > { %1278 = vrot.lane.b32.xlu0 %v2250_v9, %s2535_s23  ;;  %v2203_v27 = vrot.slane %v2796_v49, 9  ;;  %v756_v28 = vrot.slane %v754_v19, 4  ;;  %v449_v31 = vrot.slane %v447_v22, 5  ;;  %v463_v41 = vshll.u32 %v241_v35, 16 }
  0x47   : > { %992 = vrot.lane.b32.xlu1 %v2234_v51, %s2531_s9  ;;  %v459_v34 = vrot.slane %v457_v26, 4  ;;  %v2851_v49 = vcombine.low %v239_v6, %v240_v16  ;;  %v761_v50 = vrot.slane %v240_v16, 5  ;;  %v2204_v56 = vrot.slane %v239_v6, 9 }
  0x48   : > { %v755_v37 = vsel %vm2641_vm4, %v2203_v27, %v754_v19  ;;  %v465_v48 = vrot.slane %v463_v41, 5  ;;  %v764_v57 = vrot.slane %v241_v35, 5  ;;  %v2876_v19 = vld [vmem:[%s2619_s5 + $0x70] sm:$0xf] }
  0x49   : > { %v763_v59 = vrot.slane %v761_v50, 4  ;;  %v505_v27 = vshrl.u32 %v2876_v19, 16 }
  0x4a   : > { %1070 = vrot.lane.b32.xlu0 %v2696_v11, %s2530_s8  ;;  %v2235_v11 = vcombine.low %v384_v29, %v394_v30  ;;  %v757_v29 = vrot.slane %v238_v2, 5  ;;  %v446_v30 = vrot.slane %v444_v20, 4  ;;  %v762_v2 = vsel %vm2641_vm4, %v2204_v56, %v761_v50 }
  0x4b   : > { %1072 = vrot.lane.b32.xlu1 %v2250_v9, %s2530_s8 }
  0x4c   : > { %v758_v38 = vsel %vm2641_vm4, %v756_v28, %v757_v29  ;;  %v501_v28 = vshll.u32 %v2876_v19, 16 }
  0x4d   : > { %v2253_v42 = vcombine.low %v755_v37, %v758_v38  ;;  %v507_v37 = vrot.slane %v505_v27, 4  ;;  %v247_v38 = vld [vmem:[%s2619_s5 + $0x74] sm:$0x1] }
  0x4e   : > { %1105 = vrot.lane.b32.xlu0 %v2732_v45, %s2528_s6 }
  0x4f   : > { %1107 = vrot.lane.b32.xlu1 %v2766_v25, %s2528_s6 }
  0x52   : > { %1140 = vrot.lane.b32.xlu0 %v2234_v51, %s2532_s14  ;;  %v2202_v51 = vrot.slane %v2757_v15, 9  ;;  %v426_v15 = vor.u32 %v425_v7, %v422_v63  ;;  %v477_v63 = vshll.u32 %v243_v55, 16  ;;  %v765_v7 = vsel %vm2641_vm4, %v763_v59, %v764_v57 }
  0x53   : > { %1142 = vrot.lane.b32.xlu1 %v2235_v11, %s2532_s14  ;;  %v775_v57 = vrot.slane %v2876_v19, 5 }
  0x54   : > { %v748_v61 = vsel %vm2641_vm4, %v2202_v51, %v747_v44  ;;  %v427_v23 = vrot.slane %v426_v15, 4  ;;  %v479_v12 = vrot.slane %v477_v63, 5  ;;  %v2254_v15 = vcombine.low %v762_v2, %v765_v7 }
  0x55   : > { %v2252_v5 = vcombine.low %v748_v61, %v751_v62  ;;  %v481_v62 = vshrl.u32 %v243_v55, 16  ;;  %v778_v2 = vrot.slane %v247_v38, 5 }
  0x56   : > { %1175 = vrot.lane.b32.xlu0 %v2250_v9, %s2529_s7  ;;  %v435_v9 = vrot.slane %v433_v58, 4  ;;  %v432_v32 = vsel %vm2676_vm5, %v427_v23, %v431_v8  ;;  %v768_v23 = vrot.slane %v243_v55, 5 }
  0x57   : > { %1177 = vrot.lane.b32.xlu1 %v2251_v39, %s2529_s7  ;;  %v483_v14 = vrot.slane %v481_v62, 4 }
  0x58   : > { %v436_v0 = vor.u32 %v435_v9, %v431_v8 }
  0x59   : > { %v484_v16 = vor.u32 %v483_v14, %v479_v12 }
  0x5a   : > { %1210 = vrot.lane.b32.xlu0 %v2766_v25, %s2533_s20  ;;  %v437_v24 = vrot.slane %v436_v0, 4 }
  0x5b   : > { %1212 = vrot.lane.b32.xlu1 %v2787_v43, %s2533_s20  ;;  %v485_v26 = vrot.slane %v484_v16, 4 }
  0x5c   : > { %v442_v33 = vsel %vm2676_vm5, %v437_v24, %v441_v17  ;;  %v2873_v17 = vld [vmem:[%s2619_s5 + $0x6c] sm:$0xf] }
  0x5d   : > { %v2237_v36 = vcombine.low %v432_v32, %v442_v33  ;;  %v492_v24 = vshrl.u32 %v2873_v17, 16  ;;  %v770_v32 = vrot.slane %v768_v23, 4  ;;  %v2914_v56 = vcombine.low %v2873_v17, %v2876_v19 }
  0x5e   : > { %1245 = vrot.lane.b32.xlu0 %v2235_v11, %s2534_s22  ;;  %v2206_v63 = vrot.slane %v2873_v17, 9 }
  0x5f   : > { %1247 = vrot.lane.b32.xlu1 %v2236_v53, %s2534_s22 }
  0x62   : > { %1280 = vrot.lane.b32.xlu0 %v2251_v39, %s2535_s23 }
  0x63   : > { %994 = vrot.lane.b32.xlu1 %v2235_v11, %s2531_s9  ;;  %v455_v11 = vrot.slane %v453_v1, 5  ;;  %v495_v1 = vshll.u32 %v2873_v17, 16 }
  0x65   : > { %v460_v40 = vor.u32 %v459_v34, %v455_v11  ;;  %v497_v35 = vrot.slane %v495_v1, 5 }
  0x66   : > { %1282 = vrot.lane.b32.xlu0 %v2252_v5, %s2535_s23 }
  0x67   : > { %996 = vrot.lane.b32.xlu1 %v2236_v53, %s2531_s9  ;;  %v461_v47 = vrot.slane %v460_v40, 4 }
  0x69   : > { %v466_v54 = vsel %vm2676_vm5, %v461_v47, %v465_v48  ;;  %v511_v47 = vshll.u32 %v247_v38, 16 }
  0x6a   : > { %1074 = vrot.lane.b32.xlu0 %v2251_v39, %s2530_s8  ;;  %v450_v39 = vor.u32 %v449_v31, %v446_v30 }
  0x6b   : > { %1076 = vrot.lane.b32.xlu1 %v2252_v5, %s2530_s8 }
  0x6c   : > { %v451_v44 = vrot.slane %v450_v39, 4 }
  0x6e   : > { %1109 = vrot.lane.b32.xlu0 %v2787_v43, %s2528_s6  ;;  %v456_v51 = vsel %vm2676_vm5, %v451_v44, %v455_v11  ;;  %v494_v11 = vrot.slane %v492_v24, 4 }
  0x6f   : > { %1111 = vrot.lane.b32.xlu1 %v2830_v3, %s2528_s6  ;;  %v2238_v58 = vcombine.low %v456_v51, %v466_v54 }
  0x72   : > { %1144 = vrot.lane.b32.xlu0 %v2236_v53, %s2532_s14  ;;  %v242_v53 = vld [vmem:[%s2619_s5 + $0x60] sm:$0xf] }
  0x73   : > { %1146 = vrot.lane.b32.xlu1 %v2237_v36, %s2532_s14  ;;  %v468_v60 = vshrl.u32 %v242_v53, 16  ;;  %v471_v61 = vshll.u32 %v242_v53, 16  ;;  %v2885_v29 = vcombine.low %v242_v53, %v243_v55  ;;  %v2205_v30 = vrot.slane %v242_v53, 9 }
  0x74   : > { %v513_v53 = vrot.slane %v511_v47, 5 }
  0x75   : > { %v470_v8 = vrot.slane %v468_v60, 4  ;;  %v473_v9 = vrot.slane %v471_v61, 5  ;;  %v769_v40 = vsel %vm2641_vm4, %v2205_v30, %v768_v23  ;;  %v2922_v60 = vld [vmem:[%s2619_s5 + $0x78] sm:$0xf]  ;;  %v2925_v61 = vld [vmem:[%s2619_s5 + $0x7c] sm:$0xf] }
  0x76   : > { %1179 = vrot.lane.b32.xlu0 %v2252_v5, %s2529_s7  ;;  %v244_v5 = vld [vmem:[%s2619_s5 + $0x68] sm:$0x1]  ;;  %v529_v14 = vshrl.u32 %v2925_v61, 16  ;;  %v2980_v18 = vcombine.low %v2922_v60, %v2925_v61  ;;  %v2207_v21 = vrot.slane %v2922_v60, 9 }
  0x77   : > { %1181 = vrot.lane.b32.xlu1 %v2253_v42, %s2529_s7  ;;  %v474_v0 = vor.u32 %v473_v9, %v470_v8  ;;  %v487_v6 = vshll.u32 %v244_v5, 16  ;;  %v771_v33 = vrot.slane %v244_v5, 5  ;;  %v777_v9 = vrot.slane %v775_v57, 4 }
  0x78   : > { %v516_v5 = vshrl.u32 %v2922_v60, 16  ;;  %v531_v24 = vrot.slane %v529_v14, 4 }
  0x79   : > { %v475_v20 = vrot.slane %v474_v0, 4  ;;  %v489_v22 = vrot.slane %v487_v6, 5  ;;  %v772_v41 = vsel %vm2641_vm4, %v770_v32, %v771_v33  ;;  %v776_v6 = vsel %vm2641_vm4, %v2206_v63, %v775_v57  ;;  %v2956_v32 = vld [vmem:[%s2619_s5 + $0x84] sm:$0xf]  ;;  %v2959_v33 = vld [vmem:[%s2619_s5 + $0x88] sm:$0xf] }
  0x7a   : > { %1214 = vrot.lane.b32.xlu0 %v2830_v3, %s2533_s20  ;;  %v2903_v48 = vcombine.low %v769_v40, %v772_v41  ;;  %v779_v16 = vsel %vm2641_vm4, %v777_v9, %v778_v2  ;;  %v518_v17 = vrot.slane %v516_v5, 4  ;;  %v553_v41 = vshrl.u32 %v2959_v33, 16  ;;  %v2992_v2 = vld [vmem:[%s2619_s5 + $0x8c] sm:$0x1] }
  0x7b   : > { %1216 = vrot.lane.b32.xlu1 %v2851_v49, %s2533_s20  ;;  %v480_v31 = vsel %vm2676_vm5, %v475_v20, %v479_v12  ;;  %v490_v34 = vsel %vm2676_vm5, %v485_v26, %v489_v22  ;;  %v519_v12 = vshll.u32 %v2922_v60, 16  ;;  %v250_v22 = vld [vmem:[%s2619_s5 + $0x80] sm:$0x1]  ;;  %v2950_v26 = vcombine.low %v776_v6, %v779_v16 }
  0x7c   : > { %v2239_v39 = vcombine.low %v480_v31, %v490_v34  ;;  %v559_v16 = vshll.u32 %v2992_v2, 16 }
  0x7d   : > { %v521_v19 = vrot.slane %v519_v12, 5 }
  0x7e   : > { %1249 = vrot.lane.b32.xlu0 %v2237_v36, %s2534_s22 }
  0x7f   : > { %1251 = vrot.lane.b32.xlu1 %v2238_v58, %s2534_s22  ;;  %v522_v27 = vor.u32 %v521_v19, %v518_v17 }
  0x81   : > { %v523_v34 = vrot.slane %v522_v27, 4 }
  0x82   : > { %1284 = vrot.lane.b32.xlu0 %v2253_v42, %s2535_s23 }
  0x83   : > { %998 = vrot.lane.b32.xlu1 %v2237_v36, %s2531_s9  ;;  %v503_v36 = vrot.slane %v501_v28, 5  ;;  %v535_v28 = vshll.u32 %v250_v22, 16 }
  0x85   : > { %v508_v44 = vor.u32 %v507_v37, %v503_v36  ;;  %v543_v37 = vshll.u32 %v2956_v32, 16 }
  0x86   : > { %1286 = vrot.lane.b32.xlu0 %v2254_v15, %s2535_s23 }
  0x87   : > { %1000 = vrot.lane.b32.xlu1 %v2238_v58, %s2531_s9  ;;  %v509_v54 = vrot.slane %v508_v44, 4 }
  0x89   : > { %v514_v59 = vsel %vm2676_vm5, %v509_v54, %v513_v53 }
  0x8a   : > { %1078 = vrot.lane.b32.xlu0 %v2253_v42, %s2530_s8  ;;  %v498_v42 = vor.u32 %v497_v35, %v494_v11  ;;  %v782_v11 = vrot.slane %v2925_v61, 5  ;;  %v537_v35 = vrot.slane %v535_v28, 5  ;;  %v561_v28 = vrot.slane %v559_v16, 5 }
  0x8b   : > { %1080 = vrot.lane.b32.xlu1 %v2254_v15, %s2530_s8 }
  0x8c   : > { %v499_v51 = vrot.slane %v498_v42, 4  ;;  %v549_v42 = vshll.u32 %v2959_v33, 16  ;;  %v783_v12 = vsel %vm2641_vm4, %v2207_v21, %v782_v11 }
  0x8e   : > { %1113 = vrot.lane.b32.xlu0 %v2851_v49, %s2528_s6 }
  0x8f   : > { %1115 = vrot.lane.b32.xlu1 %v2885_v29, %s2528_s6 }
  0x91   : > { %v2907_v55 = vpop.permute.xlu1 %1103 }
  0x92   : > { %1148 = vrot.lane.b32.xlu0 %v2238_v58, %s2532_s14  ;;  %v2905_v50 = vpop.permute.xlu0 %1101  ;;  %v504_v58 = vsel %vm2676_vm5, %v499_v51, %v503_v36  ;;  %v540_v36 = vshrl.u32 %v2956_v32, 16 }
  0x93   : > { %1150 = vrot.lane.b32.xlu1 %v2239_v39, %s2532_s14  ;;  %v2934_v8 = vcombine.low %v504_v58, %v514_v59  ;;  %v545_v58 = vrot.slane %v543_v37, 5  ;;  %v551_v59 = vrot.slane %v549_v42, 5  ;;  %v792_v42 = vrot.slane %v2992_v2, 5 }
  0x94   : > { %v542_v53 = vrot.slane %v540_v36, 4 }
  0x96   : > { %1183 = vrot.lane.b32.xlu0 %v2254_v15, %s2529_s7  ;;  %v525_v15 = vshll.u32 %v2925_v61, 16  ;;  %v555_v61 = vrot.slane %v553_v41, 4  ;;  %v3049_v41 = vld [vmem:[%s2619_s5 + $0x94] sm:$0xf] }
  0x97   : > { %1185 = vrot.lane.b32.xlu1 %v2903_v48, %s2529_s7 }
  0x98   : > { %v2929_v62 = vpop.permute.xlu0 %1171  ;;  %v527_v23 = vrot.slane %v525_v15, 5  ;;  %v556_v6 = vor.u32 %v555_v61, %v551_v59  ;;  %v256_v61 = vld [vmem:[%s2619_s5 + $0x98] sm:$0x1] }
  0x9a   : > { %1218 = vrot.lane.b32.xlu0 %v2885_v29, %s2533_s20  ;;  %v532_v31 = vor.u32 %v531_v24, %v527_v23  ;;  %v528_v54 = vsel %vm2676_vm5, %v523_v34, %v527_v23  ;;  %v3034_v34 = vcombine.low %v2956_v32, %v2959_v33 }
  0x9b   : > { %1220 = vrot.lane.b32.xlu1 %v2914_v56, %s2533_s20  ;;  %v1067_v7 = vpop.permute.xlu1 %1066 }
  0x9c   : > { %v533_v40 = vrot.slane %v532_v31, 4 }
  0x9e   : > { %1253 = vrot.lane.b32.xlu0 %v2239_v39, %s2534_s22 }
  0x9f   : > { %1255 = vrot.lane.b32.xlu1 %v2934_v8, %s2534_s22  ;;  %v1069_v0 = vpop.permute.xlu1 %1068 }
  0xa0   : > { %v987_v20 = vpop.permute.xlu0 %986 }
  0xa1   : > { %v1311_v38 = vsel %vm1308_vm7, %v2215_v46, %v987_v20  ;;  %v785_v46 = vrot.slane %v250_v22, 5 }
  0xa2   : > { %1288 = vrot.lane.b32.xlu0 %v2903_v48, %s2535_s23  ;;  %v1359_v51 = vsel %vm1357_vm8, %v1311_v38, %v1067_v7  ;;  %v3043_v38 = vld [vmem:[%s2619_s5 + $0x90] sm:$0xf] }
  0xa3   : > { %1002 = vrot.lane.b32.xlu1 %v2239_v39, %s2531_s9  ;;  %v2953_v1 = vpop.permute.xlu1 %1173  ;;  %v1392_v7 = vsel %vm1390_vm9, %v1359_v51, %v2905_v50  ;;  %v564_v21 = vshrl.u32 %v3043_v38, 16 }
  0xa4   : > { %v989_v30 = vpop.permute.xlu0 %988 }
  0xa5   : > { %v1314_v47 = vsel %vm1308_vm7, %v2636_v10, %v989_v30  ;;  %v784_v10 = vrot.slane %v782_v11, 4 }
  0xa6   : > { %1290 = vrot.lane.b32.xlu0 %v2950_v26, %s2535_s23  ;;  %v1361_v60 = vsel %vm1357_vm8, %v1314_v47, %v1069_v0  ;;  %v546_v0 = vor.u32 %v545_v58, %v542_v53 }
  0xa7   : > { %1004 = vrot.lane.b32.xlu1 %v2934_v8, %s2531_s9  ;;  %v786_v14 = vsel %vm2641_vm4, %v784_v10, %v785_v46  ;;  %v1394_v50 = vsel %vm1390_vm9, %v1361_v60, %v2907_v55  ;;  %v567_v46 = vshll.u32 %v3043_v38, 16  ;;  %v573_v10 = vshll.u32 %v3049_v41, 16 }
  0xa8   : > { %v1137_v39 = vpop.permute.xlu0 %1136  ;;  %v3018_v55 = vcombine.low %v783_v12, %v786_v14  ;;  %v547_v27 = vrot.slane %v546_v0, 4  ;;  %v583_v12 = vshll.u32 %v256_v61, 16 }
  0xa9   : > { %v1139_v44 = vpop.permute.xlu1 %1138  ;;  %v1425_v9 = vsel %vm1423_vm10, %v1392_v7, %v1137_v39  ;;  %v569_v58 = vrot.slane %v567_v46, 5  ;;  %v575_v60 = vrot.slane %v573_v10, 5 }
  0xaa   : > { %1082 = vrot.lane.b32.xlu0 %v2903_v48, %s2530_s8  ;;  %v538_v48 = vsel %vm2676_vm5, %v533_v40, %v537_v35  ;;  %v1458_v19 = vsel %vm1456_vm11, %v1425_v9, %v2929_v62  ;;  %v1427_v20 = vsel %vm1423_vm10, %v1394_v50, %v1139_v44  ;;  %v557_v62 = vrot.slane %v556_v6, 4  ;;  %v3085_v6 = vld [vmem:[%s2619_s5 + $0xa0] sm:$0xf] }
  0xab   : > { %1084 = vrot.lane.b32.xlu1 %v2950_v26, %s2530_s8  ;;  %v3001_v5 = vcombine.low %v528_v54, %v538_v48  ;;  %v1460_v31 = vsel %vm1456_vm11, %v1427_v20, %v2953_v1  ;;  %v789_v35 = vrot.slane %v2959_v33, 5  ;;  %v552_v1 = vsel %vm2676_vm5, %v547_v27, %v551_v59 }
  0xac   : > { %v1207_v57 = vpop.permute.xlu0 %1206  ;;  %v2208_v33 = vrot.slane %v2956_v32, 9  ;;  %v577_v54 = vshrl.u32 %v3049_v41, 16  ;;  %v566_v48 = vrot.slane %v564_v21, 4  ;;  %v597_v27 = vshll.u32 %v3085_v6, 16 }
  0xad   : > { %v1209_v63 = vpop.permute.xlu1 %1208  ;;  %v1491_v22 = vsel %vm1489_vm12, %v1458_v19, %v1207_v57  ;;  %v791_v47 = vrot.slane %v789_v35, 4  ;;  %v796_v19 = vrot.slane %v3049_v41, 5 }
  0xae   : > { %1117 = vrot.lane.b32.xlu0 %v2914_v56, %s2528_s6  ;;  %v1493_v11 = vsel %vm1489_vm12, %v1460_v31, %v1209_v63  ;;  %v790_v32 = vsel %vm2641_vm4, %v2208_v33, %v789_v35  ;;  %v579_v63 = vrot.slane %v577_v54, 4  ;;  %v570_v9 = vor.u32 %v569_v58, %v566_v48 }
  0xaf   : > { %1119 = vrot.lane.b32.xlu1 %v2980_v18, %s2528_s6  ;;  %v793_v57 = vsel %vm2641_vm4, %v791_v47, %v792_v42  ;;  %v799_v35 = vrot.slane %v256_v61, 5 }
  0xb0   : > { %v1242_v15 = vpop.permute.xlu0 %1241  ;;  %v3077_v7 = vcombine.low %v790_v32, %v793_v57  ;;  %v580_v50 = vor.u32 %v579_v63, %v575_v60  ;;  %v571_v16 = vrot.slane %v570_v9, 4 }
  0xb1   : > { %v1244_v17 = vpop.permute.xlu1 %1243  ;;  %v1524_v23 = vsel %vm1522_vm13, %v1491_v22, %v1242_v15  ;;  %v3082_v15 = vld [vmem:[%s2619_s5 + $0x9c] sm:$0xf] }
  0xb2   : > { %1152 = vrot.lane.b32.xlu0 %v2934_v8, %s2532_s14  ;;  %v1526_v36 = vsel %vm1522_vm13, %v1493_v11, %v1244_v17  ;;  %v585_v17 = vrot.slane %v583_v12, 5  ;;  %v581_v22 = vrot.slane %v580_v50, 4  ;;  %v576_v31 = vsel %vm2676_vm5, %v571_v16, %v575_v60 }
  0xb3   : > { %1154 = vrot.lane.b32.xlu1 %v3001_v5, %s2532_s14  ;;  %v798_v11 = vrot.slane %v796_v19, 4 }
  0xb4   : > { %v1277_v24 = vpop.permute.xlu0 %1276 }
  0xb5   : > { %v3021_v30 = vpop.permute.xlu1 %990  ;;  %v1557_v8 = vsel %vm1555_vm14, %v1524_v23, %v1277_v24  ;;  %v591_v23 = vshll.u32 %v3082_v15, 16  ;;  %v601_v24 = vshrl.u32 %v3085_v6, 16 }
  0xb6   : > { %1187 = vrot.lane.b32.xlu0 %v2950_v26, %s2529_s7  ;;  %2318 = vmatprep.mubr.msk.bf16.mxu0 %vm1608_vm15, %v1557_v8  ;;  %v562_v26 = vsel %vm2676_vm5, %v557_v62, %v561_v28  ;;  %v3100_v28 = vcombine.low %v3043_v38, %v3049_v41  ;;  %v2209_v8 = vrot.slane %v3043_v38, 9  ;;  %v1317_v38 = vsel %vm1308_vm7, %v2631_v4, %v3021_v30 }
  0xb7   : > { %1189 = vrot.lane.b32.xlu1 %v3018_v55, %s2529_s7  ;;  %v3058_v44 = vcombine.low %v552_v1, %v562_v26  ;;  %v586_v1 = vsel %vm2676_vm5, %v581_v22, %v585_v17  ;;  %v593_v26 = vrot.slane %v591_v23, 5  ;;  %v603_v41 = vrot.slane %v601_v24, 4  ;;  %v3166_v22 = vld [vmem:[%s2619_s5 + $0xa8] sm:$0xf] }
  0xb8   : > { %v1279_v37 = vpop.permute.xlu0 %1278  ;;  %v3120_v47 = vcombine.low %v576_v31, %v586_v1  ;;  %v797_v21 = vsel %vm2641_vm4, %v2209_v8, %v796_v19  ;;  %v800_v4 = vsel %vm2641_vm4, %v798_v11, %v799_v35  ;;  %v803_v17 = vrot.slane %v3085_v6, 5 }
  0xb9   : > { %v3045_v39 = vpop.permute.xlu1 %992  ;;  %v1559_v40 = vsel %vm1555_vm14, %v1526_v36, %v1279_v37  ;;  %v3140_v60 = vcombine.low %v797_v21, %v800_v4  ;;  %v612_v11 = vshrl.u32 %v3166_v22, 16  ;;  %v615_v35 = vshll.u32 %v3166_v22, 16 }
  0xba   : > { %1222 = vrot.lane.b32.xlu0 %v2980_v18, %s2533_s20  ;;  %2319 = vmatmul.mubr.msk.bf16.vlgmr.msra.gmra.mrb[0].mxu0 %vm1608_vm15, %v1559_v40  ;;  %v599_v40 = vrot.slane %v597_v27, 5  ;;  %v1320_v48 = vsel %vm1308_vm7, %v2732_v45, %v3045_v39  ;;  %v3172_v27 = vld [vmem:[%s2619_s5 + $0xac] sm:$0xf]  ;;  %v805_v31 = vrot.slane %v803_v17, 4 }
  0xbb   : > { %1224 = vrot.lane.b32.xlu1 %v3034_v34, %s2533_s20  ;;  %v621_v1 = vshll.u32 %v3172_v27, 16 }
  0xbc   : > { %v1071_v51 = vpop.permute.xlu0 %1070  ;;  %v604_v32 = vor.u32 %v603_v41, %v599_v40  ;;  %v617_v41 = vrot.slane %v615_v35, 5 }
  0xbd   : > { %v3064_v53 = vpop.permute.xlu1 %1072  ;;  %v1363_v42 = vsel %vm1357_vm8, %v1317_v38, %v1071_v51  ;;  %v262_v38 = vld [vmem:[%s2619_s5 + $0xb0] sm:$0x1] }
  0xbe   : > { %1257 = vrot.lane.b32.xlu0 %v3001_v5, %s2534_s22  ;;  %v631_v4 = vshll.u32 %v262_v38, 16 }
  0xbf   : > { %1259 = vrot.lane.b32.xlu1 %v3058_v44, %s2534_s22 }
  0xc0   : > { %v1106_v59 = vpop.permute.xlu0 %1105 }
  0xc1   : > { %v1108_v2 = vpop.permute.xlu1 %1107  ;;  %v1396_v54 = vsel %vm1390_vm9, %v1363_v42, %v1106_v59  ;;  %v1365_v59 = vsel %vm1357_vm8, %v1320_v48, %v3064_v53  ;;  %v623_v42 = vrot.slane %v621_v1, 5  ;;  %v3208_v48 = vld [vmem:[%s2619_s5 + $0xb8] sm:$0xf] }
  0xc2   : > { %1292 = vrot.lane.b32.xlu0 %v3018_v55, %s2535_s23  ;;  %v1398_v9 = vsel %vm1390_vm9, %v1365_v59, %v1108_v2  ;;  %v633_v59 = vrot.slane %v631_v4, 5 }
  0xc3   : > { %1006 = vrot.lane.b32.xlu1 %v3001_v5, %s2531_s9  ;;  %v588_v5 = vshrl.u32 %v3082_v15, 16 }
  0xc4   : > { %v1141_v14 = vpop.permute.xlu0 %1140 }
  0xc5   : > { %v1143_v0 = vpop.permute.xlu1 %1142  ;;  %v590_v36 = vrot.slane %v588_v5, 4  ;;  %v1429_v51 = vsel %vm1423_vm10, %v1396_v54, %v1141_v14  ;;  %v605_v14 = vrot.slane %v604_v32, 4 }
  0xc6   : > { %1294 = vrot.lane.b32.xlu0 %v3077_v7, %s2535_s23 }
  0xc7   : > { %1008 = vrot.lane.b32.xlu1 %v3058_v44, %s2531_s9  ;;  %v594_v30 = vor.u32 %v593_v26, %v590_v36 }
  0xc8   : > { %v1176_v20 = vpop.permute.xlu0 %1175 }
  0xc9   : > { %v1178_v62 = vpop.permute.xlu1 %1177  ;;  %v1462_v58 = vsel %vm1456_vm11, %v1429_v51, %v1176_v20  ;;  %v595_v12 = vrot.slane %v594_v30, 4  ;;  %v3205_v51 = vld [vmem:[%s2619_s5 + $0xb4] sm:$0xf] }
  0xca   : > { %1086 = vrot.lane.b32.xlu0 %v3018_v55, %s2530_s8  ;;  %v3110_v55 = vld [vmem:[%s2619_s5 + $0xa4] sm:$0x1] }
  0xcb   : > { %1088 = vrot.lane.b32.xlu1 %v3077_v7, %s2530_s8  ;;  %v607_v46 = vshll.u32 %v3110_v55, 16  ;;  %v600_v20 = vsel %vm2676_vm5, %v595_v12, %v599_v40  ;;  %v614_v40 = vrot.slane %v612_v11, 4  ;;  %v645_v12 = vshll.u32 %v3208_v48, 16 }
  0xcc   : > { %v1211_v37 = vpop.permute.xlu0 %1210 }
  0xcd   : > { %v1213_v33 = vpop.permute.xlu1 %1212  ;;  %v1495_v61 = vsel %vm1489_vm12, %v1462_v58, %v1211_v37  ;;  %v609_v63 = vrot.slane %v607_v46, 5  ;;  %v625_v37 = vshrl.u32 %v3172_v27, 16 }
  0xce   : > { %1121 = vrot.lane.b32.xlu0 %v3034_v34, %s2528_s6 }
  0xcf   : > { %1123 = vrot.lane.b32.xlu1 %v3100_v28, %s2528_s6  ;;  %v627_v21 = vrot.slane %v625_v37, 4 }
  0xd0   : > { %v1246_v10 = vpop.permute.xlu0 %1245 }
  0xd1   : > { %v1248_v57 = vpop.permute.xlu1 %1247  ;;  %v1528_v45 = vsel %vm1522_vm13, %v1495_v61, %v1246_v10  ;;  %v618_v10 = vor.u32 %v617_v41, %v614_v40  ;;  %v628_v32 = vor.u32 %v627_v21, %v623_v42  ;;  %v810_v61 = vrot.slane %v3172_v27, 5 }
  0xd2   : > { %1156 = vrot.lane.b32.xlu0 %v3058_v44, %s2532_s14  ;;  %v1431_v44 = vsel %vm1423_vm10, %v1398_v9, %v1143_v0  ;;  %v3157_v0 = vcombine.low %v3082_v15, %v3085_v6  ;;  %v2210_v6 = vrot.slane %v3082_v15, 9 }
  0xd3   : > { %1158 = vrot.lane.b32.xlu1 %v3120_v47, %s2532_s14  ;;  %v1464_v16 = vsel %vm1456_vm11, %v1431_v44, %v1178_v62  ;;  %v806_v62 = vrot.slane %v3110_v55, 5  ;;  %v619_v58 = vrot.slane %v618_v10, 4  ;;  %v629_v9 = vrot.slane %v628_v32, 4 }
  0xd4   : > { %v1281_v39 = vpop.permute.xlu0 %1280  ;;  %v1497_v2 = vsel %vm1489_vm12, %v1464_v16, %v1213_v33  ;;  %v804_v15 = vsel %vm2641_vm4, %v2210_v6, %v803_v17  ;;  %v3223_v44 = vcombine.low %v3166_v22, %v3172_v27  ;;  %v813_v17 = vrot.slane %v262_v38, 5 }
  0xd5   : > { %v3145_v50 = vpop.permute.xlu1 %994  ;;  %v1561_v53 = vsel %vm1555_vm14, %v1528_v45, %v1281_v39  ;;  %v1530_v19 = vsel %vm1522_vm13, %v1497_v2, %v1248_v57  ;;  %v807_v55 = vsel %vm2641_vm4, %v805_v31, %v806_v62  ;;  %v639_v45 = vshll.u32 %v3205_v51, 16 }
  0xd6   : > { %1191 = vrot.lane.b32.xlu0 %v3077_v7, %s2529_s7  ;;  %2322 = vmatprep.mubr.msk.bf16.mxu0 %vm1608_vm15, %v1561_v53  ;;  %v610_v7 = vsel %vm2676_vm5, %v605_v14, %v609_v63  ;;  %v3200_v54 = vcombine.low %v804_v15, %v807_v55  ;;  %v649_v39 = vshrl.u32 %v3208_v48, 16  ;;  %v2211_v53 = vrot.slane %v3166_v22, 9 }
  0xd7   : > { %1193 = vrot.lane.b32.xlu1 %v3140_v60, %s2529_s7  ;;  %v3181_v8 = vcombine.low %v600_v20, %v610_v7  ;;  %v624_v16 = vsel %vm2676_vm5, %v619_v58, %v623_v42  ;;  %v812_v2 = vrot.slane %v810_v61, 4  ;;  %v634_v20 = vsel %vm2676_vm5, %v629_v9, %v633_v59 }
  0xd8   : > { %v1283_v5 = vpop.permute.xlu0 %1282  ;;  %v641_v7 = vrot.slane %v639_v45, 5  ;;  %v651_v27 = vrot.slane %v649_v39, 4  ;;  %v1323_v22 = vsel %vm1308_vm7, %v2766_v25, %v3145_v50  ;;  %v3243_v31 = vcombine.low %v624_v16, %v634_v20 }
  0xd9   : > { %v3168_v23 = vpop.permute.xlu1 %996  ;;  %v1563_v24 = vsel %vm1555_vm14, %v1530_v19, %v1283_v5  ;;  %v811_v11 = vsel %vm2641_vm4, %v2211_v53, %v810_v61  ;;  %v814_v25 = vsel %vm2641_vm4, %v812_v2, %v813_v17  ;;  %v817_v61 = vrot.slane %v3208_v48, 5 }
  0xda   : > { %1226 = vrot.lane.b32.xlu0 %v3100_v28, %s2533_s20  ;;  %2323 = vmatmul.mubr.msk.bf16.gmra.mrb[4].mxu0 %vm1608_vm15, %v1563_v24  ;;  %v647_v24 = vrot.slane %v645_v12, 5  ;;  %v1326_v40 = vsel %vm1308_vm7, %v2787_v43, %v3168_v23  ;;  %v3263_v42 = vcombine.low %v811_v11, %v814_v25  ;;  %v2212_v17 = vrot.slane %v3205_v51, 9 }
  0xdb   : > { %1228 = vrot.lane.b32.xlu1 %v3157_v0, %s2533_s20 }
  0xdc   : > { %v1075_v36 = vpop.permute.xlu0 %1074  ;;  %v652_v15 = vor.u32 %v651_v27, %v647_v24 }
  0xdd   : > { %v3187_v26 = vpop.permute.xlu1 %1076  ;;  %v1367_v62 = vsel %vm1357_vm8, %v1323_v22, %v1075_v36 }
  0xde   : > { %1261 = vrot.lane.b32.xlu0 %v3120_v47, %s2534_s22 }
  0xdf   : > { %1263 = vrot.lane.b32.xlu1 %v3181_v8, %s2534_s22 }
  0xe0   : > { %v1110_v33 = vpop.permute.xlu0 %1109 }
  0xe1   : > { %v1112_v46 = vpop.permute.xlu1 %1111  ;;  %v1400_v37 = vsel %vm1390_vm9, %v1367_v62, %v1110_v33  ;;  %v1369_v33 = vsel %vm1357_vm8, %v1326_v40, %v3187_v26  ;;  %v268_v62 = vld [vmem:[%s2619_s5 + $0xc8] sm:$0x1] }
  0xe2   : > { %1296 = vrot.lane.b32.xlu0 %v3140_v60, %s2535_s23  ;;  %v1402_v10 = vsel %vm1390_vm9, %v1369_v33, %v1112_v46  ;;  %v3276_v46 = vld [vmem:[%s2619_s5 + $0xc0] sm:$0xf] }
  0xe3   : > { %1010 = vrot.lane.b32.xlu1 %v3120_v47, %s2531_s9  ;;  %v636_v47 = vshrl.u32 %v3205_v51, 16  ;;  %v826_v53 = vshll.u32 %v3276_v46, 16 }
  0xe4   : > { %v1145_v30 = vpop.permute.xlu0 %1144 }
  0xe5   : > { %v1147_v57 = vpop.permute.xlu1 %1146  ;;  %v638_v19 = vrot.slane %v636_v47, 4  ;;  %v1433_v36 = vsel %vm1423_vm10, %v1400_v37, %v1145_v30  ;;  %v3287_v47 = vld [vmem:[%s2619_s5 + $0xc4] sm:$0xf]  ;;  %v828_v27 = vrot.slane %v826_v53, 5 }
  0xe6   : > { %1298 = vrot.lane.b32.xlu0 %v3200_v54, %s2535_s23  ;;  %v1435_v30 = vsel %vm1423_vm10, %v1402_v10, %v1147_v57  ;;  %v3283_v57 = vcombine.low %v3205_v51, %v3208_v48  ;;  %v836_v48 = vshrl.u32 %v3287_v47, 16  ;;  %v832_v16 = vshll.u32 %v3287_v47, 16 }
  0xe7   : > { %1012 = vrot.lane.b32.xlu1 %v3181_v8, %s2531_s9  ;;  %v642_v50 = vor.u32 %v641_v7, %v638_v19  ;;  %v819_v19 = vrot.slane %v817_v61, 4  ;;  %v818_v51 = vsel %vm2641_vm4, %v2212_v17, %v817_v61 }
  0xe8   : > { %v1180_v63 = vpop.permute.xlu0 %1179  ;;  %v838_v22 = vrot.slane %v836_v48, 4 }
  0xe9   : > { %v1182_v14 = vpop.permute.xlu1 %1181  ;;  %v1466_v41 = vsel %vm1456_vm11, %v1433_v36, %v1180_v63  ;;  %v643_v4 = vrot.slane %v642_v50, 4  ;;  %v842_v50 = vshll.u32 %v268_v62, 16 }
  0xea   : > { %1090 = vrot.lane.b32.xlu0 %v3140_v60, %s2530_s8  ;;  %v3233_v60 = vld [vmem:[%s2619_s5 + $0xbc] sm:$0x1]  ;;  %v1468_v58 = vsel %vm1456_vm11, %v1435_v30, %v1182_v14  ;;  %v823_v14 = vshrl.u32 %v3276_v46, 16  ;;  %v2263_v30 = vcombine.low %v3276_v46, %v3287_v47 }
  0xeb   : > { %1092 = vrot.lane.b32.xlu1 %v3200_v54, %s2530_s8  ;;  %v655_v35 = vshll.u32 %v3233_v60, 16  ;;  %v648_v9 = vsel %vm2676_vm5, %v643_v4, %v647_v24 }
  0xec   : > { %v1215_v5 = vpop.permute.xlu0 %1214  ;;  %v825_v24 = vrot.slane %v823_v14, 4  ;;  %v271_v14 = vld [vmem:[%s2619_s5 + $0xd4] sm:$0x1] }
  0xed   : > { %v1217_v6 = vpop.permute.xlu1 %1216  ;;  %v1499_v38 = vsel %vm1489_vm12, %v1466_v41, %v1215_v5  ;;  %v657_v21 = vrot.slane %v655_v35, 5  ;;  %v820_v5 = vrot.slane %v3233_v60, 5 }
  0xee   : > { %1125 = vrot.lane.b32.xlu0 %v3157_v0, %s2528_s6  ;;  %v1501_v59 = vsel %vm1489_vm12, %v1468_v58, %v1217_v6  ;;  %v834_v6 = vrot.slane %v832_v16, 5  ;;  %v829_v37 = vor.u32 %v828_v27, %v825_v24  ;;  %v876_v24 = vshll.u32 %v271_v14, 16 }
  0xef   : > { %1127 = vrot.lane.b32.xlu1 %v3223_v44, %s2528_s6  ;;  %v821_v60 = vsel %vm2641_vm4, %v819_v19, %v820_v5 }
  0xf0   : > { %v1250_v1 = vpop.permute.xlu0 %1249  ;;  %v839_v25 = vor.u32 %v838_v22, %v834_v6  ;;  %v830_v41 = vrot.slane %v829_v37, 4 }
  0xf1   : > { %v1252_v55 = vpop.permute.xlu1 %1251  ;;  %v1532_v43 = vsel %vm1522_vm13, %v1499_v38, %v1250_v1  ;;  %v3325_v1 = vcombine.low %v818_v51, %v821_v60  ;;  %v844_v38 = vrot.slane %v842_v50, 5 }
  0xf2   : > { %1160 = vrot.lane.b32.xlu0 %v3181_v8, %s2532_s14  ;;  %v653_v8 = vrot.slane %v652_v15, 4  ;;  %v1534_v63 = vsel %vm1522_vm13, %v1501_v59, %v1252_v55  ;;  %v3330_v15 = vld [vmem:[%s2619_s5 + $0xcc] sm:$0xf]  ;;  %v3333_v55 = vld [vmem:[%s2619_s5 + $0xd0] sm:$0xf]  ;;  %v840_v33 = vrot.slane %v839_v25, 4 }
  0xf3   : > { %1162 = vrot.lane.b32.xlu1 %v3243_v31, %s2532_s14  ;;  %v860_v10 = vshll.u32 %v3330_v15, 16  ;;  %v2213_v59 = vrot.slane %v3276_v46, 9  ;;  %v878_v25 = vrot.slane %v876_v24, 5 }
  0xf4   : > { %v1285_v23 = vpop.permute.xlu0 %1284  ;;  %v658_v45 = vsel %vm2676_vm5, %v653_v8, %v657_v21  ;;  %v857_v21 = vshrl.u32 %v3330_v15, 16  ;;  %v845_v58 = vsel %vm2676_vm5, %v840_v33, %v844_v38 }
  0xf5   : > { %v3268_v26 = vpop.permute.xlu1 %998  ;;  %v1565_v32 = vsel %vm1555_vm14, %v1532_v43, %v1285_v23  ;;  %v3306_v2 = vcombine.low %v648_v9, %v658_v45  ;;  %v870_v43 = vshrl.u32 %v3333_v55, 16  ;;  %v866_v23 = vshll.u32 %v3333_v55, 16 }
  0xf6   : > { %1195 = vrot.lane.b32.xlu0 %v3200_v54, %s2529_s7  ;;  %2326 = vmatprep.mubr.msk.bf16.mxu0 %vm1608_vm15, %v1565_v32  ;;  %v835_v32 = vsel %vm2676_vm5, %v830_v41, %v834_v6  ;;  %v859_v61 = vrot.slane %v857_v21, 4  ;;  %v854_v9 = vrot.slane %v268_v62, 5 }
  0xf7   : > { %1197 = vrot.lane.b32.xlu1 %v3263_v42, %s2529_s7  ;;  %v868_v45 = vrot.slane %v866_v23, 5  ;;  %v2264_v46 = vcombine.low %v835_v32, %v845_v58  ;;  %v888_v23 = vrot.slane %v271_v14, 5 }
  0xf8   : > { %v1287_v54 = vpop.permute.xlu0 %1286 }
  0xf9   : > { %v3294_v39 = vpop.permute.xlu1 %1000  ;;  %v1567_v12 = vsel %vm1555_vm14, %v1534_v63, %v1287_v54  ;;  %v862_v63 = vrot.slane %v860_v10, 5 }
  0xfa   : > { %1230 = vrot.lane.b32.xlu0 %v3223_v44, %s2533_s20  ;;  %2327 = vmatmul.mubr.msk.bf16.gmra.mrb[8].mxu0 %vm1608_vm15, %v1567_v12  ;;  %v1332_v22 = vsel %vm1308_vm7, %v2851_v49, %v3294_v39 }
  0xfb   : > { %1232 = vrot.lane.b32.xlu1 %v3283_v57, %s2533_s20  ;;  %v863_v16 = vor.u32 %v862_v63, %v859_v61 }
  0xfc   : > { %v1079_v20 = vpop.permute.xlu0 %1078 }
  0xfd   : > { %v3310_v7 = vpop.permute.xlu1 %1080  ;;  %v864_v60 = vrot.slane %v863_v16, 4 }
  0xfe   : > { %1265 = vrot.lane.b32.xlu0 %v3243_v31, %s2534_s22  ;;  %v1373_v62 = vsel %vm1357_vm8, %v1332_v22, %v3310_v7 }
  0xff   : > { %1267 = vrot.lane.b32.xlu1 %v3306_v2, %s2534_s22 }
 0x100   : > { %v1114_v11 = vpop.permute.xlu0 %1113 }
 0x101   : > { %v3321_v35 = vpop.permute.xlu1 %1115 }
 0x102   : > { %1300 = vrot.lane.b32.xlu0 %v3263_v42, %s2535_s23  ;;  %v1406_v50 = vsel %vm1390_vm9, %v1373_v62, %v3321_v35  ;;  %v2266_v35 = vcombine.low %v3330_v15, %v3333_v55 }
 0x103   : > { %1014 = vrot.lane.b32.xlu1 %v3243_v31, %s2531_s9  ;;  %v851_v31 = vrot.slane %v3287_v47, 5  ;;  %v872_v47 = vrot.slane %v870_v43, 4 }
 0x104   : > { %v1149_v36 = vpop.permute.xlu0 %1148 }
 0x105   : > { %v1151_v40 = vpop.permute.xlu1 %1150  ;;  %v853_v54 = vrot.slane %v851_v31, 4  ;;  %v852_v48 = vsel %vm2641_vm4, %v2213_v59, %v851_v31  ;;  %v873_v5 = vor.u32 %v872_v47, %v868_v45 }
 0x106   : > { %1302 = vrot.lane.b32.xlu0 %v3325_v1, %s2535_s23 }
 0x107   : > { %1016 = vrot.lane.b32.xlu1 %v3306_v2, %s2531_s9  ;;  %v855_v19 = vsel %vm2641_vm4, %v853_v54, %v854_v9  ;;  %v874_v37 = vrot.slane %v873_v5, 4  ;;  %s200_s9 = scalar_lea.vmem [#allocation2], %s3722_s27 }
 0x108   : > { %v1184_v4 = vpop.permute.xlu0 %1183  ;;  %s2069_s10 = sshll.u32 %s200_s9, 4  ;;  %s3733_s10 = int_to_ptr.vmem [resolvable:$true] %s2069_s10 }
 0x109   : > { %v1186_v8 = vpop.permute.xlu1 %1185  ;;  %v879_v21 = vsel %vm2676_vm5, %v874_v37, %v878_v25 }
 0x10a   : > { %1094 = vrot.lane.b32.xlu0 %v3263_v42, %s2530_s8  ;;  %v1329_v42 = vsel %vm1308_vm7, %v2830_v3, %v3268_v26 }
 0x10b   : > { %1096 = vrot.lane.b32.xlu1 %v3325_v1, %s2530_s8  ;;  %v1371_v17 = vsel %vm1357_vm8, %v1329_v42, %v1079_v20  ;;  %v2265_v20 = vcombine.low %v852_v48, %v855_v19  ;;  %s2288_s8 = sshll.u32 %s2584_s19, 4 }
 0x10c   : > { %v1219_v12 = vpop.permute.xlu0 %1218  ;;  %v1404_v27 = vsel %vm1390_vm9, %v1371_v17, %v1114_v11  ;;  %s3731_s13 = scalar_lea.hbm %s3931_s3, %s2288_s8 }
 0x10d   : > { %v1221_v53 = vpop.permute.xlu1 %1220  ;;  %v1437_v26 = vsel %vm1423_vm10, %v1404_v27, %v1149_v36  ;;  %v885_v36 = vrot.slane %v3333_v55, 5 }
 0x10e   : > { %1129 = vrot.lane.b32.xlu0 %v3283_v57, %s2528_s6  ;;  %v1470_v51 = vsel %vm1456_vm11, %v1437_v26, %v1184_v4 }
 0x10f   : > { %1131 = vrot.lane.b32.xlu1 %v2263_v30, %s2528_s6  ;;  %v1503_v11 = vsel %vm1489_vm12, %v1470_v51, %v1219_v12  ;;  %v887_v43 = vrot.slane %v885_v36, 4 }
 0x110   : > { %v1254_v3 = vpop.permute.xlu0 %1253 }
 0x111   : > { %v1256_v6 = vpop.permute.xlu1 %1255  ;;  %v1536_v49 = vsel %vm1522_vm13, %v1503_v11, %v1254_v3  ;;  %v889_v58 = vsel %vm2641_vm4, %v887_v43, %v888_v23 }
 0x112   : > { %1164 = vrot.lane.b32.xlu0 %v3306_v2, %s2532_s14  ;;  %v1439_v2 = vsel %vm1423_vm10, %v1406_v50, %v1151_v40  ;;  %v869_v40 = vsel %vm2676_vm5, %v864_v60, %v868_v45 }
 0x113   : > { %1166 = vrot.lane.b32.xlu1 %v2264_v46, %s2532_s14  ;;  %v1472_v7 = vsel %vm1456_vm11, %v1439_v2, %v1186_v8  ;;  %v2267_v55 = vcombine.low %v869_v40, %v879_v21  ;;  %s2050_s14 = scalar_lea.sflag [#allocation3], %s3722_s27 }
 0x114   : > { %v1289_v39 = vpop.permute.xlu0 %1288  ;;  %v1505_v38 = vsel %vm1489_vm12, %v1472_v7, %v1221_v53 }
 0x115   : > { %v1003_v41 = vpop.permute.xlu1 %1002  ;;  %v1569_v33 = vsel %vm1555_vm14, %v1536_v49, %v1289_v39  ;;  %v1538_v10 = vsel %vm1522_vm13, %v1505_v38, %v1256_v6 }
 0x116   : > { %1199 = vrot.lane.b32.xlu0 %v3325_v1, %s2529_s7  ;;  %2330 = vmatprep.mubr.msk.bf16.mxu0 %vm1608_vm15, %v1569_v33  ;;  %v2214_v1 = vrot.slane %v3330_v15, 9  ;;  %v1335_v13 = vsel %vm1308_vm7, %v2885_v29, %v1003_v41 }
 0x117   : > { %1201 = vrot.lane.b32.xlu1 %v2265_v20, %s2529_s7  ;;  %s3475_s7 = scalar_lea.vmem %s3930_s2, %s2292_s30 }
 0x118   : > { %v1291_v31 = vpop.permute.xlu0 %1290  ;;  %v886_v52 = vsel %vm2641_vm4, %v2214_v1, %v885_v36 }
 0x119   : > { %v1005_v4 = vpop.permute.xlu1 %1004  ;;  %v1571_v8 = vsel %vm1555_vm14, %v1538_v10, %v1291_v31  ;;  %v2268_v59 = vcombine.low %v886_v52, %v889_v58 }
 0x11a   : > { %1234 = vrot.lane.b32.xlu0 %v2263_v30, %s2533_s20  ;;  %2331 = vmatmul.mubr.msk.bf16.gmra.mrb[12].mxu0 %vm1608_vm15, %v1571_v8  ;;  %v1338_v16 = vsel %vm1308_vm7, %v2914_v56, %v1005_v4 }
 0x11b   : > { %1236 = vrot.lane.b32.xlu1 %v2266_v35, %s2533_s20  ;;  %s2432_s20 = scalar_lea.vmem %s3733_s10, 16 }
 0x11c   : > { %v1083_v32 = vpop.permute.xlu0 %1082  ;;  %p2433_p11 = scmp.ne.s32.totalorder %s3733_s10, %s2432_s20 }
 0x11d   : > { %v1085_v15 = vpop.permute.xlu1 %1084  ;;  %v1375_v14 = vsel %vm1357_vm8, %v1335_v13, %v1083_v32 }
 0x11e   : > { %1269 = vrot.lane.b32.xlu0 %v2264_v46, %s2534_s22  ;;  %v1377_v19 = vsel %vm1357_vm8, %v1338_v16, %v1085_v15  ;;  %p2434_p12 = pnand %p2433_p11, %p2601_p5 }
 0x11f   : > { %1271 = vrot.lane.b32.xlu1 %v2267_v55, %s2534_s22  ;;  %s2536_s22 = smov [#allocation2]  }
 0x120   : > { %v1118_v61 = vpop.permute.xlu0 %1117  ;;  %p2435_p13 = pneg %p2434_p12 }
 0x121   : > { %v1120_v30 = vpop.permute.xlu1 %1119  ;;  %v1408_v53 = vsel %vm1390_vm9, %v1375_v14, %v1118_v61 }
 0x122   : > { %1304 = vrot.lane.b32.xlu0 %v2265_v20, %s2535_s23  ;;  %v1410_v24 = vsel %vm1390_vm9, %v1377_v19, %v1120_v30 }
 0x123   : > { %1306 = vrot.lane.b32.xlu1 %v2268_v59, %s2535_s23  ;;  %s2436_s23 = sshll.u32 %s2536_s22, 4  ;;  %s2437_s23 = int_to_ptr.vmem [resolvable:$false] %s2436_s23 }
 0x124   : > { %v1153_v63 = vpop.permute.xlu0 %1152  ;;  %s2438_s28 = scalar_lea.vmem %s2437_s23, 32  ;;  %p2439_p0 = scmp.lt.s32.totalorder %s3733_s10, %s2437_s23 }
 0x125   : > { %v1155_v54 = vpop.permute.xlu1 %1154  ;;  %v1441_v46 = vsel %vm1423_vm10, %v1408_v53, %v1153_v63  ;;  %p2440_p1 = scmp.lt.s32.totalorder %s2438_s28, %s2432_s20 }
 0x126   : > { %v1443_v3 = vsel %vm1423_vm10, %v1410_v24, %v1155_v54 }
 0x127   : > { %p2441_p2 = por %p2440_p1, %p2439_p0 }
 0x128   : > { %v1188_v9 = vpop.permute.xlu0 %1187 }
 0x129   : > { %v1190_v45 = vpop.permute.xlu1 %1189  ;;  %v1474_v17 = vsel %vm1456_vm11, %v1441_v46, %v1188_v9  ;;  %p2442_p3 = pnand %p2441_p2, %p2435_p13 }
 0x12a   : > { %v1476_v22 = vsel %vm1456_vm11, %v1443_v3, %v1190_v45 }
 0x12c   : > { %v1223_v47 = vpop.permute.xlu0 %1222 }
 0x12d   : > { %v1225_v12 = vpop.permute.xlu1 %1224  ;;  %v1507_v5 = vsel %vm1489_vm12, %v1474_v17, %v1223_v47 }
 0x12e   : > { %v1509_v56 = vsel %vm1489_vm12, %v1476_v22, %v1225_v12 }
 0x130   : > { %v1258_v42 = vpop.permute.xlu0 %1257 }
 0x131   : > { %v1260_v48 = vpop.permute.xlu1 %1259  ;;  %v1540_v29 = vsel %vm1522_vm13, %v1507_v5, %v1258_v42 }
 0x132   : > { %v1542_v51 = vsel %vm1522_vm13, %v1509_v56, %v1260_v48 }
 0x134   : > { %v1293_v27 = vpop.permute.xlu0 %1292 }
 0x135   : > { %v1007_v26 = vpop.permute.xlu1 %1006  ;;  %v1573_v6 = vsel %vm1555_vm14, %v1540_v29, %v1293_v27 }
 0x136   : > { %2334 = vmatprep.mubr.msk.bf16.mxu1 %vm1608_vm15, %v1573_v6  ;;  %v1341_v7 = vsel %vm1308_vm7, %v2980_v18, %v1007_v26 }
 0x138   : > { %v1295_v20 = vpop.permute.xlu0 %1294 }
 0x139   : > { %v1009_v60 = vpop.permute.xlu1 %1008  ;;  %v1575_v62 = vsel %vm1555_vm14, %v1542_v51, %v1295_v20 }
 0x13a   : > { %2335 = vmatmul.mubr.msk.bf16.vlgmr.msra.gmra.mrb[0].mxu1 %vm1608_vm15, %v1575_v62  ;;  %v1344_v31 = vsel %vm1308_vm7, %v3034_v34, %v1009_v60 }
 0x13c   : > { %v1087_v11 = vpop.permute.xlu0 %1086 }
 0x13d   : > { %v1089_v37 = vpop.permute.xlu1 %1088  ;;  %v1379_v38 = vsel %vm1357_vm8, %v1341_v7, %v1087_v11 }
 0x13e   : > { %v1381_v43 = vsel %vm1357_vm8, %v1344_v31, %v1089_v37 }
 0x140   : > { %v1122_v25 = vpop.permute.xlu0 %1121 }
 0x141   : > { %v1124_v50 = vpop.permute.xlu1 %1123  ;;  %v1412_v35 = vsel %vm1390_vm9, %v1379_v38, %v1122_v25 }
 0x142   : > { %v1414_v4 = vsel %vm1390_vm9, %v1381_v43, %v1124_v50 }
 0x144   : > { %v1157_v49 = vpop.permute.xlu0 %1156 }
 0x145   : > { %v1159_v39 = vpop.permute.xlu1 %1158  ;;  %v1445_v21 = vsel %vm1423_vm10, %v1412_v35, %v1157_v49 }
 0x146   : > { %v1447_v55 = vsel %vm1423_vm10, %v1414_v4, %v1159_v39 }
 0x148   : > { %v1192_v36 = vpop.permute.xlu0 %1191 }
 0x149   : > { %v1194_v2 = vpop.permute.xlu1 %1193  ;;  %v1478_v1 = vsel %vm1456_vm11, %v1445_v21, %v1192_v36 }
 0x14a   : > { %v1480_v58 = vsel %vm1456_vm11, %v1447_v55, %v1194_v2 }
 0x14c   : > { %v1227_v41 = vpop.permute.xlu0 %1226 }
 0x14d   : > { %v1229_v33 = vpop.permute.xlu1 %1228  ;;  %v1511_v23 = vsel %vm1489_vm12, %v1478_v1, %v1227_v41 }
 0x14e   : > { %v1513_v34 = vsel %vm1489_vm12, %v1480_v58, %v1229_v33 }
 0x150   : > { %v1262_v40 = vpop.permute.xlu0 %1261 }
 0x151   : > { %v1264_v10 = vpop.permute.xlu1 %1263  ;;  %v1544_v18 = vsel %vm1522_vm13, %v1511_v23, %v1262_v40 }
 0x152   : > { %v1546_v15 = vsel %vm1522_vm13, %v1513_v34, %v1264_v10 }
 0x154   : > { %v1297_v8 = vpop.permute.xlu0 %1296 }
 0x155   : > { %v1011_v32 = vpop.permute.xlu1 %1010  ;;  %v1577_v52 = vsel %vm1555_vm14, %v1544_v18, %v1297_v8 }
 0x156   : > { %2338 = vmatprep.mubr.msk.bf16.mxu1 %vm1608_vm15, %v1577_v52  ;;  %v1347_v46 = vsel %vm1308_vm7, %v3100_v28, %v1011_v32 }
 0x158   : > { %v1299_v59 = vpop.permute.xlu0 %1298 }
 0x159   : > { %v1013_v61 = vpop.permute.xlu1 %1012  ;;  %v1579_v30 = vsel %vm1555_vm14, %v1546_v15, %v1299_v59 }
 0x15a   : > { %2339 = vmatmul.mubr.msk.bf16.gmra.mrb[4].mxu1 %vm1608_vm15, %v1579_v30  ;;  %v1350_v24 = vsel %vm1308_vm7, %v3157_v0, %v1013_v61 }
 0x15c   : > { %v1091_v63 = vpop.permute.xlu0 %1090 }
 0x15d   : > { %v1093_v54 = vpop.permute.xlu1 %1092  ;;  %v1383_v48 = vsel %vm1357_vm8, %v1347_v46, %v1091_v63 }
 0x15e   : > { %v1385_v27 = vsel %vm1357_vm8, %v1350_v24, %v1093_v54 }
 0x160   : > { %v1126_v9 = vpop.permute.xlu0 %1125 }
 0x161   : > { %v1128_v45 = vpop.permute.xlu1 %1127  ;;  %v1416_v16 = vsel %vm1390_vm9, %v1383_v48, %v1126_v9 }
 0x162   : > { %v1418_v26 = vsel %vm1390_vm9, %v1385_v27, %v1128_v45 }
 0x164   : > { %v1161_v47 = vpop.permute.xlu0 %1160 }
 0x165   : > { %v1163_v12 = vpop.permute.xlu1 %1162  ;;  %v1449_v19 = vsel %vm1423_vm10, %v1416_v16, %v1161_v47 }
 0x166   : > { %v1451_v22 = vsel %vm1423_vm10, %v1418_v26, %v1163_v12 }
 0x168   : > { %v1196_v13 = vpop.permute.xlu0 %1195 }
 0x169   : > { %v1198_v14 = vpop.permute.xlu1 %1197  ;;  %v1482_v29 = vsel %vm1456_vm11, %v1449_v19, %v1196_v13 }
 0x16a   : > { %v1484_v20 = vsel %vm1456_vm11, %v1451_v22, %v1198_v14 }
 0x16c   : > { %v1231_v53 = vpop.permute.xlu0 %1230 }
 0x16d   : > { %v1233_v42 = vpop.permute.xlu1 %1232  ;;  %v1515_v3 = vsel %vm1489_vm12, %v1482_v29, %v1231_v53 }
 0x16e   : > { %v1517_v0 = vsel %vm1489_vm12, %v1484_v20, %v1233_v42 }
 0x170   : > { %v1266_v17 = vpop.permute.xlu0 %1265 }
 0x171   : > { %v1268_v5 = vpop.permute.xlu1 %1267  ;;  %v1548_v28 = vsel %vm1522_vm13, %v1515_v3, %v1266_v17 }
 0x172   : > { %v1550_v60 = vsel %vm1522_vm13, %v1517_v0, %v1268_v5 }
 0x174   : > { %v1301_v6 = vpop.permute.xlu0 %1300 }
 0x175   : > { %v1015_v56 = vpop.permute.xlu1 %1014  ;;  %v1581_v51 = vsel %vm1555_vm14, %v1548_v28, %v1301_v6 }
 0x176   : > { %2342 = vmatprep.mubr.msk.bf16.mxu1 %vm1608_vm15, %v1581_v51  ;;  %v1353_v40 = vsel %vm1308_vm7, %v3223_v44, %v1015_v56 }
 0x178   : > { %v1303_v62 = vpop.permute.xlu0 %1302 }
 0x179   : > { %v1017_v11 = vpop.permute.xlu1 %1016  ;;  %v1583_v37 = vsel %vm1555_vm14, %v1550_v60, %v1303_v62 }
 0x17a   : > { %2343 = vmatmul.mubr.msk.bf16.gmra.mrb[8].mxu1 %vm1608_vm15, %v1583_v37  ;;  %v1356_v10 = vsel %vm1308_vm7, %v3283_v57, %v1017_v11 }
 0x17c   : > { %v1095_v25 = vpop.permute.xlu0 %1094 }
 0x17d   : > { %v1097_v50 = vpop.permute.xlu1 %1096  ;;  %v1387_v31 = vsel %vm1357_vm8, %v1353_v40, %v1095_v25 }
 0x17e   : > { %v1389_v43 = vsel %vm1357_vm8, %v1356_v10, %v1097_v50 }
 0x180   : > { %v1130_v49 = vpop.permute.xlu0 %1129 }
 0x181   : > { %v1132_v39 = vpop.permute.xlu1 %1131  ;;  %v1420_v44 = vsel %vm1390_vm9, %v1387_v31, %v1130_v49 }
 0x182   : > { %v1422_v18 = vsel %vm1390_vm9, %v1389_v43, %v1132_v39 }
 0x184   : > { %v1165_v36 = vpop.permute.xlu0 %1164 }
 0x185   : > { %v1167_v2 = vpop.permute.xlu1 %1166  ;;  %v1453_v57 = vsel %vm1423_vm10, %v1420_v44, %v1165_v36 }
 0x186   : > { %v1455_v52 = vsel %vm1423_vm10, %v1422_v18, %v1167_v2 }
 0x188   : > { %v1200_v41 = vpop.permute.xlu0 %1199 }
 0x189   : > { %v1202_v33 = vpop.permute.xlu1 %1201  ;;  %v1486_v58 = vsel %vm1456_vm11, %v1453_v57, %v1200_v41 }
 0x18a   : > { %v1488_v15 = vsel %vm1456_vm11, %v1455_v52, %v1202_v33 }
 0x18c   : > { %v1235_v7 = vpop.permute.xlu0 %1234 }
 0x18d   : > { %v1237_v38 = vpop.permute.xlu1 %1236  ;;  %v3477_v35 = vpop.f32.mrb[0].mxu0  ;;  %v1519_v59 = vsel %vm1489_vm12, %v1486_v58, %v1235_v7 }
 0x18e   : > { %2014 = vst.msk [vmem:[%s3475_s7 + $0x10] sm:$0xff] %vm1357_vm8, %v3477_v35  ;;  %v3484_v21 = vpop.f32.mrb[1].mxu0  ;;  %v1809_v61 = vsel %vm1357_vm8, %v3477_v35, 0.0  ;;  %v1521_v30 = vsel %vm1489_vm12, %v1488_v15, %v1237_v38 }
 0x18f   : > { %2012 = vst.msk [vmem:[%s3475_s7] sm:$0xff] %vm1357_vm8, %v3484_v21  ;;  %v3492_v1 = vpop.f32.mrb[2].mxu0  ;;  %v1806_v8 = vsel %vm1357_vm8, %v3484_v21, 0.0 }
 0x190   : > { %2015 = vst.msk [vmem:[%s3475_s7 + $0x18] sm:$0xff] %vm1357_vm8, %v3492_v1  ;;  %v3499_v23 = vpop.f32.mrb[3].mxu0  ;;  %v1270_v4 = vpop.permute.xlu0 %1269  ;;  %v1811_v45 = vsel %vm1357_vm8, %v3492_v1, 0.0 }
 0x191   : > { %v1272_v55 = vpop.permute.xlu1 %1271  ;;  %v1807_v32 = vsel %vm1357_vm8, %v3499_v23, 0.0  ;;  %2013 = vst.msk [vmem:[%s3475_s7 + $0x8] sm:$0xff] %vm1357_vm8, %v3499_v23  ;;  %v1552_v54 = vsel %vm1522_vm13, %v1519_v59, %v1270_v4 }
 0x192   : > { %v1808_v34 = vadd.f32 %v1807_v32, %v1806_v8  ;;  %v1554_v47 = vsel %vm1522_vm13, %v1521_v30, %v1272_v55 }
 0x194   : > { %v1810_v63 = vadd.f32 %v1809_v61, %v1808_v34  ;;  %v1305_v9 = vpop.permute.xlu0 %1304 }
 0x195   : > { %v1307_v12 = vpop.permute.xlu1 %1306  ;;  %v1585_v13 = vsel %vm1555_vm14, %v1552_v54, %v1305_v9 }
 0x196   : > { %v1587_v14 = vsel %vm1555_vm14, %v1554_v47, %v1307_v12  ;;  %2346 = vmatprep.mubr.msk.bf16.mxu1 %vm1608_vm15, %v1585_v13  ;;  %v1812_v53 = vadd.f32 %v1811_v45, %v1810_v63 }
 0x197   : > { %2347 = vmatmul.mubr.msk.bf16.gmra.mrb[12].mxu1 %vm1608_vm15, %v1587_v14 }
 0x1ad   : > { %v3525_v42 = vpop.f32.mrb[4].mxu0 }
 0x1ae   : > { %2018 = vst.msk [vmem:[%s3475_s7 + $0x30] sm:$0xff] %vm1357_vm8, %v3525_v42  ;;  %v3530_v46 = vpop.f32.mrb[5].mxu0  ;;  %v1817_v29 = vsel %vm1357_vm8, %v3525_v42, 0.0 }
 0x1af   : > { %v1813_v48 = vsel %vm1357_vm8, %v3530_v46, 0.0  ;;  %2016 = vst.msk [vmem:[%s3475_s7 + $0x20] sm:$0xff] %vm1357_vm8, %v3530_v46  ;;  %v3537_v16 = vpop.f32.mrb[6].mxu0 }
 0x1b0   : > { %v1814_v17 = vadd.f32 %v1813_v48, %v1812_v53  ;;  %2019 = vst.msk [vmem:[%s3475_s7 + $0x38] sm:$0xff] %vm1357_vm8, %v3537_v16  ;;  %v3542_v19 = vpop.f32.mrb[7].mxu0  ;;  %v1819_v3 = vsel %vm1357_vm8, %v3537_v16, 0.0 }
 0x1b1   : > { %v1815_v5 = vsel %vm1357_vm8, %v3542_v19, 0.0  ;;  %2017 = vst.msk [vmem:[%s3475_s7 + $0x28] sm:$0xff] %vm1357_vm8, %v3542_v19 }
 0x1b2   : > { %v1816_v24 = vadd.f32 %v1815_v5, %v1814_v17 }
 0x1b4   : > { %v1818_v27 = vadd.f32 %v1817_v29, %v1816_v24 }
 0x1b6   : > { %v1820_v26 = vadd.f32 %v1819_v3, %v1818_v27 }
 0x1cd   : > { %v3553_v28 = vpop.f32.mrb[8].mxu0 }
 0x1ce   : > { %2022 = vst.msk [vmem:[%s3475_s7 + $0x50] sm:$0xff] %vm1357_vm8, %v3553_v28  ;;  %v3558_v6 = vpop.f32.mrb[9].mxu0  ;;  %v1825_v62 = vsel %vm1357_vm8, %v3553_v28, 0.0 }
 0x1cf   : > { %v1821_v22 = vsel %vm1357_vm8, %v3558_v6, 0.0  ;;  %2020 = vst.msk [vmem:[%s3475_s7 + $0x40] sm:$0xff] %vm1357_vm8, %v3558_v6  ;;  %v3565_v56 = vpop.f32.mrb[10].mxu0 }
 0x1d0   : > { %v1822_v51 = vadd.f32 %v1821_v22, %v1820_v26  ;;  %2023 = vst.msk [vmem:[%s3475_s7 + $0x58] sm:$0xff] %vm1357_vm8, %v3565_v56  ;;  %v3570_v20 = vpop.f32.mrb[11].mxu0  ;;  %v1827_v37 = vsel %vm1357_vm8, %v3565_v56, 0.0 }
 0x1d1   : > { %v1823_v0 = vsel %vm1357_vm8, %v3570_v20, 0.0  ;;  %2021 = vst.msk [vmem:[%s3475_s7 + $0x48] sm:$0xff] %vm1357_vm8, %v3570_v20 }
 0x1d2   : > { %v1824_v60 = vadd.f32 %v1823_v0, %v1822_v51 }
 0x1d4   : > { %v1826_v11 = vadd.f32 %v1825_v62, %v1824_v60 }
 0x1d6   : > { %v1828_v25 = vadd.f32 %v1827_v37, %v1826_v11 }
 0x1ed   : > { %v3581_v50 = vpop.f32.mrb[12].mxu0 }
 0x1ee   : > { %2026 = vst.msk [vmem:[%s3475_s7 + $0x70] sm:$0xff] %vm1357_vm8, %v3581_v50  ;;  %v3586_v49 = vpop.f32.mrb[13].mxu0  ;;  %v1833_v38 = vsel %vm1357_vm8, %v3581_v50, 0.0 }
 0x1ef   : > { %v1829_v39 = vsel %vm1357_vm8, %v3586_v49, 0.0  ;;  %2024 = vst.msk [vmem:[%s3475_s7 + $0x60] sm:$0xff] %vm1357_vm8, %v3586_v49  ;;  %v3593_v36 = vpop.f32.mrb[14].mxu0 }
 0x1f0   : > { %v1830_v2 = vadd.f32 %v1829_v39, %v1828_v25  ;;  %2027 = vst.msk [vmem:[%s3475_s7 + $0x78] sm:$0xff] %vm1357_vm8, %v3593_v36  ;;  %v3598_v41 = vpop.f32.mrb[15].mxu0  ;;  %v1835_v10 = vsel %vm1357_vm8, %v3593_v36, 0.0 }
 0x1f1   : > { %v1831_v33 = vsel %vm1357_vm8, %v3598_v41, 0.0  ;;  %2025 = vst.msk [vmem:[%s3475_s7 + $0x68] sm:$0xff] %vm1357_vm8, %v3598_v41 }
 0x1f2   : > { %v1832_v7 = vadd.f32 %v1831_v33, %v1830_v2 }
 0x1f4   : > { %v1834_v40 = vadd.f32 %v1833_v38, %v1832_v7 }
 0x1f6   : > { %v1836_v31 = vadd.f32 %v1835_v10, %v1834_v40 }
 0x20d   : > { %v3609_v43 = vpop.f32.mrb[0].mxu1 }
 0x20e   : > { %2030 = vst.msk [vmem:[%s3475_s7 + $0x90] sm:$0xff] %vm1357_vm8, %v3609_v43  ;;  %v3614_v44 = vpop.f32.mrb[1].mxu1  ;;  %v1841_v52 = vsel %vm1357_vm8, %v3609_v43, 0.0 }
 0x20f   : > { %v1837_v4 = vsel %vm1357_vm8, %v3614_v44, 0.0  ;;  %2028 = vst.msk [vmem:[%s3475_s7 + $0x80] sm:$0xff] %vm1357_vm8, %v3614_v44  ;;  %v3621_v18 = vpop.f32.mrb[2].mxu1 }
 0x210   : > { %v1838_v57 = vadd.f32 %v1837_v4, %v1836_v31  ;;  %2031 = vst.msk [vmem:[%s3475_s7 + $0x98] sm:$0xff] %vm1357_vm8, %v3621_v18  ;;  %v3626_v8 = vpop.f32.mrb[3].mxu1  ;;  %v1843_v34 = vsel %vm1357_vm8, %v3621_v18, 0.0 }
 0x211   : > { %v1839_v55 = vsel %vm1357_vm8, %v3626_v8, 0.0  ;;  %2029 = vst.msk [vmem:[%s3475_s7 + $0x88] sm:$0xff] %vm1357_vm8, %v3626_v8 }
 0x212   : > { %v1840_v32 = vadd.f32 %v1839_v55, %v1838_v57 }
 0x214   : > { %v1842_v58 = vadd.f32 %v1841_v52, %v1840_v32 }
 0x216   : > { %v1844_v15 = vadd.f32 %v1843_v34, %v1842_v58 }
 0x22d   : > { %v3637_v59 = vpop.f32.mrb[4].mxu1 }
 0x22e   : > { %2034 = vst.msk [vmem:[%s3475_s7 + $0xb0] sm:$0xff] %vm1357_vm8, %v3637_v59  ;;  %v3642_v61 = vpop.f32.mrb[5].mxu1  ;;  %v1849_v12 = vsel %vm1357_vm8, %v3637_v59, 0.0 }
 0x22f   : > { %v1845_v30 = vsel %vm1357_vm8, %v3642_v61, 0.0  ;;  %2032 = vst.msk [vmem:[%s3475_s7 + $0xa0] sm:$0xff] %vm1357_vm8, %v3642_v61  ;;  %v3649_v63 = vpop.f32.mrb[6].mxu1 }
 0x230   : > { %v1846_v54 = vadd.f32 %v1845_v30, %v1844_v15  ;;  %2035 = vst.msk [vmem:[%s3475_s7 + $0xb8] sm:$0xff] %vm1357_vm8, %v3649_v63  ;;  %v3654_v9 = vpop.f32.mrb[7].mxu1  ;;  %v1851_v14 = vsel %vm1357_vm8, %v3649_v63, 0.0 }
 0x231   : > { %v1847_v45 = vsel %vm1357_vm8, %v3654_v9, 0.0  ;;  %2033 = vst.msk [vmem:[%s3475_s7 + $0xa8] sm:$0xff] %vm1357_vm8, %v3654_v9 }
 0x232   : > { %v1848_v47 = vadd.f32 %v1847_v45, %v1846_v54 }
 0x234   : > { %v1850_v13 = vadd.f32 %v1849_v12, %v1848_v47 }
 0x236   : > { %v1852_v53 = vadd.f32 %v1851_v14, %v1850_v13 }
 0x24d   : > { %v3665_v48 = vpop.f32.mrb[8].mxu1 }
 0x24e   : > { %2038 = vst.msk [vmem:[%s3475_s7 + $0xd0] sm:$0xff] %vm1357_vm8, %v3665_v48  ;;  %v3670_v17 = vpop.f32.mrb[9].mxu1  ;;  %v1857_v22 = vsel %vm1357_vm8, %v3665_v48, 0.0 }
 0x24f   : > { %v1853_v5 = vsel %vm1357_vm8, %v3670_v17, 0.0  ;;  %2036 = vst.msk [vmem:[%s3475_s7 + $0xc0] sm:$0xff] %vm1357_vm8, %v3670_v17  ;;  %v3677_v24 = vpop.f32.mrb[10].mxu1 }
 0x250   : > { %v1854_v29 = vadd.f32 %v1853_v5, %v1852_v53  ;;  %2039 = vst.msk [vmem:[%s3475_s7 + $0xd8] sm:$0xff] %vm1357_vm8, %v3677_v24  ;;  %v3682_v27 = vpop.f32.mrb[11].mxu1  ;;  %v1859_v0 = vsel %vm1357_vm8, %v3677_v24, 0.0 }
 0x251   : > { %v1855_v3 = vsel %vm1357_vm8, %v3682_v27, 0.0  ;;  %2037 = vst.msk [vmem:[%s3475_s7 + $0xc8] sm:$0xff] %vm1357_vm8, %v3682_v27 }
 0x252   : > { %v1856_v26 = vadd.f32 %v1855_v3, %v1854_v29 }
 0x254   : > { %v1858_v51 = vadd.f32 %v1857_v22, %v1856_v26 }
 0x256   : > { %v1860_v60 = vadd.f32 %v1859_v0, %v1858_v51 }
 0x26a   : > { %v3693_v62 = vpop.f32.mrb[12].mxu1 }
 0x26b   : > { %2042 = vst.msk [vmem:[%s3475_s7 + $0xf0] sm:$0xff] %vm1357_vm8, %v3693_v62  ;;  %v3698_v11 = vpop.f32.mrb[13].mxu1  ;;  %v1865_v38 = vsel %vm1357_vm8, %v3693_v62, 0.0 }
 0x26c   : > { %v1861_v37 = vsel %vm1357_vm8, %v3698_v11, 0.0  ;;  %2040 = vst.msk [vmem:[%s3475_s7 + $0xe0] sm:$0xff] %vm1357_vm8, %v3698_v11  ;;  %v3705_v25 = vpop.f32.mrb[14].mxu1 }
 0x26d   : > { %v1862_v39 = vadd.f32 %v1861_v37, %v1860_v60  ;;  %2043 = vst.msk [vmem:[%s3475_s7 + $0xf8] sm:$0xff] %vm1357_vm8, %v3705_v25  ;;  %v3710_v2 = vpop.f32.mrb[15].mxu1  ;;  %v1867_v10 = vsel %vm1357_vm8, %v3705_v25, 0.0 }
 0x26e   : > { %v1863_v33 = vsel %vm1357_vm8, %v3710_v2, 0.0  ;;  %2041 = vst.msk [vmem:[%s3475_s7 + $0xe8] sm:$0xff] %vm1357_vm8, %v3710_v2 }
 0x26f   : > { %v1864_v7 = vadd.f32 %v1863_v33, %v1862_v39 }
 0x271   : > { %v1866_v40 = vadd.f32 %v1865_v38, %v1864_v7 }
 0x273   : > { %v1868_v31 = vadd.f32 %v1867_v10, %v1866_v40 }
 0x275   : > { %v1869_v4 = vrot.slane %v1868_v31, 4 }
 0x277   : > { %v1870_v57 = vadd.f32 %v1869_v4, %v1868_v31 }
 0x279   : > { %v1871_v55 = vrot.slane %v1870_v57, 2 }
 0x27b   : > { %v1872_v32 = vadd.f32 %v1871_v55, %v1870_v57 }
 0x27d   : > { %v1873_v52 = vrot.slane %v1872_v32, 1 }
 0x27f   : > { %v1874_v58 = vadd.f32 %v1873_v52, %v1872_v32 }
 0x281   : > { %v1875_v34 = vmul.f32 0.00390625, %v1874_v58  ;;  %2010 = vst.msk [vmem:[%s200_s9] sm:$0x1] %vm2009_vm0, %v1874_v58 }
 0x282   : > { %2445 = shalt.err (!%p2442_p3)
}
 0x283   : > { %s2446_s29 = scalar_lea.hbm %s3731_s13, 16  ;;  %s2450_s6 = scalar_lea.hbm %s3931_s3, 32 }
 0x284   : > { %p2447_p4 = scmp.ne.s32.totalorder %s3731_s13, %s2446_s29  ;;  %p2451_p9 = scmp.lt.u32.totalorder %s3731_s13, %s3931_s3 }
 0x285   : > { %p2452_p10 = scmp.lt.u32.totalorder %s2450_s6, %s2446_s29  ;;  %p2454_p12 = scmp.lt.u32.totalorder %s2446_s29, %s3731_s13 }
 0x286   : > { %p2448_p7 = pnand %p2447_p4, %p2601_p5 }
 0x287   : > { %p2453_p11 = por %p2452_p10, %p2451_p9 }
 0x288   : > { %p2449_p8 = pneg %p2448_p7 }
 0x289   : > { %p2455_p13 = por %p2454_p12, %p2453_p11 }
 0x28b   : > { %p2456_p0 = pnand %p2455_p13, %p2449_p8 }
 0x28d   : > { %2459 = shalt.err (!%p2456_p0)
}
 0x28e   : > { %2359 = dma.vmem_to_hbm [thread:$0]  (%p2601_p5), %s3733_s10, 16, %s3731_s13, %s2050_s14   ;;  %v1876_v15 = vsub.f32 %v3484_v21, %v1875_v34  ;;  %v1877_v30 = vsub.f32 %v3499_v23, %v1875_v34  ;;  %v1878_v54 = vsub.f32 %v3477_v35, %v1875_v34  ;;  %v1879_v45 = vsub.f32 %v3492_v1, %v1875_v34 }
 0x28f   : > { %v1880_v47 = vsub.f32 %v3530_v46, %v1875_v34  ;;  %v1881_v12 = vsub.f32 %v3542_v19, %v1875_v34  ;;  %v1882_v13 = vsub.f32 %v3525_v42, %v1875_v34  ;;  %v1883_v14 = vsub.f32 %v3537_v16, %v1875_v34  ;;  %s206_s10 = scalar_lea.vmem [#allocation4], %s3722_s27  ;;  %s3884_s14 = scalar_lea.hbm %s3932_s4, %s2288_s8 }
 0x290   : > { %v1884_v53 = vsub.f32 %v3558_v6, %v1875_v34  ;;  %v1885_v5 = vsub.f32 %v3570_v20, %v1875_v34  ;;  %v1886_v21 = vsub.f32 %v3553_v28, %v1875_v34  ;;  %v1887_v23 = vsub.f32 %v3565_v56, %v1875_v34  ;;  %s2082_s11 = sshll.u32 %s206_s10, 4  ;;  %s2054_s20 = scalar_lea.sflag [#allocation5], %s3722_s27  ;;  %s3886_s11 = int_to_ptr.vmem [resolvable:$true] %s2082_s11 }
 0x291   : > { %v1888_v35 = vsub.f32 %v3586_v49, %v1875_v34  ;;  %v1889_v1 = vsub.f32 %v3598_v41, %v1875_v34  ;;  %v1890_v46 = vsub.f32 %v3581_v50, %v1875_v34  ;;  %v1891_v19 = vsub.f32 %v3593_v36, %v1875_v34  ;;  %s2460_s22 = scalar_lea.vmem %s3886_s11, 16  ;;  %s2537_s23 = smov [#allocation4]  }
 0x292   : > { %v1892_v42 = vsub.f32 %v3614_v44, %v1875_v34  ;;  %v1893_v16 = vsub.f32 %v3626_v8, %v1875_v34  ;;  %v3777_v6 = vsub.f32 %v3609_v43, %v1875_v34  ;;  %v3780_v20 = vsub.f32 %v3621_v18, %v1875_v34  ;;  %p2461_p1 = scmp.ne.s32.totalorder %s3886_s11, %s2460_s22  ;;  %s2464_s19 = sshll.u32 %s2537_s23, 4  ;;  %s2465_s19 = int_to_ptr.vmem [resolvable:$false] %s2464_s19 }
 0x293   : > { %v3783_v28 = vsub.f32 %v3642_v61, %v1875_v34  ;;  %v3786_v56 = vsub.f32 %v3654_v9, %v1875_v34  ;;  %v3789_v50 = vsub.f32 %v3637_v59, %v1875_v34  ;;  %v3792_v49 = vsub.f32 %v3649_v63, %v1875_v34  ;;  %s2466_s28 = scalar_lea.vmem %s2465_s19, 32  ;;  %p2467_p4 = scmp.lt.s32.totalorder %s3886_s11, %s2465_s19 }
 0x294   : > { %v3795_v36 = vsub.f32 %v3670_v17, %v1875_v34  ;;  %v3798_v41 = vsub.f32 %v3682_v27, %v1875_v34  ;;  %v3801_v43 = vsub.f32 %v3665_v48, %v1875_v34  ;;  %v3804_v44 = vsub.f32 %v3677_v24, %v1875_v34  ;;  %p2462_p2 = pnand %p2461_p1, %p2601_p5  ;;  %p2468_p7 = scmp.lt.s32.totalorder %s2466_s28, %s2460_s22 }
 0x295   : > { %v3807_v18 = vsub.f32 %v3698_v11, %v1875_v34  ;;  %v3810_v8 = vsub.f32 %v3710_v2, %v1875_v34  ;;  %v3813_v59 = vsub.f32 %v3693_v62, %v1875_v34  ;;  %v3816_v61 = vsub.f32 %v3705_v25, %v1875_v34 }
 0x296   : > { %v1908_v63 = vmul.f32 %v1876_v15, %v1876_v15  ;;  %v1909_v9 = vmul.f32 %v1877_v30, %v1877_v30  ;;  %v1910_v17 = vmul.f32 %v1878_v54, %v1878_v54  ;;  %v1911_v48 = vmul.f32 %v1879_v45, %v1879_v45  ;;  %p2463_p3 = pneg %p2462_p2  ;;  %p2469_p8 = por %p2468_p7, %p2467_p4 }
 0x297   : > { %v1912_v3 = vmul.f32 %v1880_v47, %v1880_v47  ;;  %v1913_v51 = vmul.f32 %v1881_v12, %v1881_v12  ;;  %v1914_v62 = vmul.f32 %v1882_v13, %v1882_v13  ;;  %v1915_v25 = vmul.f32 %v1883_v14, %v1883_v14 }
 0x298   : > { %v1940_v29 = vsel %vm1357_vm8, %v1908_v63, 0.0  ;;  %v1941_v24 = vsel %vm1357_vm8, %v1909_v9, 0.0  ;;  %v1943_v26 = vsel %vm1357_vm8, %v1910_v17, 0.0  ;;  %v1945_v0 = vsel %vm1357_vm8, %v1911_v48, 0.0  ;;  %p2470_p9 = pnand %p2469_p8, %p2463_p3 }
 0x299   : > { %v1942_v27 = vadd.f32 %v1941_v24, %v1940_v29  ;;  %v1947_v11 = vsel %vm1357_vm8, %v1912_v3, 0.0  ;;  %v1949_v39 = vsel %vm1357_vm8, %v1913_v51, 0.0  ;;  %v1916_v33 = vmul.f32 %v1884_v53, %v1884_v53 }
 0x29a   : > { %v1951_v7 = vsel %vm1357_vm8, %v1914_v62, 0.0  ;;  %v1917_v40 = vmul.f32 %v1885_v5, %v1885_v5  ;;  %v1953_v10 = vsel %vm1357_vm8, %v1915_v25, 0.0  ;;  %v1918_v4 = vmul.f32 %v1886_v21, %v1886_v21 }
 0x29b   : > { %v1944_v22 = vadd.f32 %v1943_v26, %v1942_v27  ;;  %v1955_v57 = vsel %vm1357_vm8, %v1916_v33, 0.0  ;;  %v1919_v32 = vmul.f32 %v1887_v23, %v1887_v23  ;;  %v1920_v34 = vmul.f32 %v1888_v35, %v1888_v35 }
 0x29c   : > { %v1957_v52 = vsel %vm1357_vm8, %v1917_v40, 0.0  ;;  %v1959_v15 = vsel %vm1357_vm8, %v1918_v4, 0.0  ;;  %v1921_v54 = vmul.f32 %v1889_v1, %v1889_v1  ;;  %v1922_v12 = vmul.f32 %v1890_v46, %v1890_v46 }
 0x29d   : > { %v1946_v60 = vadd.f32 %v1945_v0, %v1944_v22  ;;  %v1961_v45 = vsel %vm1357_vm8, %v1919_v32, 0.0  ;;  %v1963_v13 = vsel %vm1357_vm8, %v1920_v34, 0.0  ;;  %v1923_v53 = vmul.f32 %v1891_v19, %v1891_v19 }
 0x29e   : > { %v1965_v5 = vsel %vm1357_vm8, %v1921_v54, 0.0  ;;  %v1924_v23 = vmul.f32 %v1892_v42, %v1892_v42  ;;  %v1967_v63 = vsel %vm1357_vm8, %v1922_v12, 0.0  ;;  %v1925_v35 = vmul.f32 %v1893_v16, %v1893_v16 }
 0x29f   : > { %v1948_v37 = vadd.f32 %v1947_v11, %v1946_v60  ;;  %v1969_v17 = vsel %vm1357_vm8, %v1923_v53, 0.0  ;;  %v1926_v1 = vmul.f32 %v3777_v6, %v3777_v6  ;;  %v1927_v19 = vmul.f32 %v3780_v20, %v3780_v20 }
 0x2a0   : > { %v1971_v46 = vsel %vm1357_vm8, %v1924_v23, 0.0  ;;  %v1973_v24 = vsel %vm1357_vm8, %v1925_v35, 0.0  ;;  %v1928_v42 = vmul.f32 %v3783_v28, %v3783_v28  ;;  %v1929_v26 = vmul.f32 %v3786_v56, %v3786_v56 }
 0x2a1   : > { %v1950_v2 = vadd.f32 %v1949_v39, %v1948_v37  ;;  %v1975_v16 = vsel %vm1357_vm8, %v1926_v1, 0.0  ;;  %v1977_v6 = vsel %vm1357_vm8, %v1927_v19, 0.0  ;;  %v1930_v51 = vmul.f32 %v3789_v50, %v3789_v50 }
 0x2a2   : > { %v1979_v20 = vsel %vm1357_vm8, %v1928_v42, 0.0  ;;  %v1931_v60 = vmul.f32 %v3792_v49, %v3792_v49  ;;  %v1981_v28 = vsel %vm1357_vm8, %v1929_v26, 0.0  ;;  %v1932_v11 = vmul.f32 %v3795_v36, %v3795_v36 }
 0x2a3   : > { %v1952_v38 = vadd.f32 %v1951_v7, %v1950_v2  ;;  %v1983_v56 = vsel %vm1357_vm8, %v1930_v51, 0.0  ;;  %v1933_v25 = vmul.f32 %v3798_v41, %v3798_v41  ;;  %v1934_v2 = vmul.f32 %v3801_v43, %v3801_v43 }
 0x2a4   : > { %v1985_v50 = vsel %vm1357_vm8, %v1931_v60, 0.0  ;;  %v1987_v49 = vsel %vm1357_vm8, %v1932_v11, 0.0  ;;  %v1935_v7 = vmul.f32 %v3804_v44, %v3804_v44  ;;  %v1936_v40 = vmul.f32 %v3807_v18, %v3807_v18 }
 0x2a5   : > { %v1954_v31 = vadd.f32 %v1953_v10, %v1952_v38  ;;  %v1989_v36 = vsel %vm1357_vm8, %v1933_v25, 0.0  ;;  %v1991_v41 = vsel %vm1357_vm8, %v1934_v2, 0.0  ;;  %v1939_v18 = vmul.f32 %v3816_v61, %v3816_v61 }
 0x2a6   : > { %v1993_v43 = vsel %vm1357_vm8, %v1935_v7, 0.0  ;;  %v1995_v44 = vsel %vm1357_vm8, %v1936_v40, 0.0 }
 0x2a7   : > { %v1956_v55 = vadd.f32 %v1955_v57, %v1954_v31  ;;  %v1937_v31 = vmul.f32 %v3810_v8, %v3810_v8  ;;  %v1938_v57 = vmul.f32 %v3813_v59, %v3813_v59  ;;  %v2001_v34 = vsel %vm1357_vm8, %v1939_v18, 0.0 }
 0x2a9   : > { %v1958_v58 = vadd.f32 %v1957_v52, %v1956_v55  ;;  %v1997_v32 = vsel %vm1357_vm8, %v1937_v31, 0.0  ;;  %v1999_v8 = vsel %vm1357_vm8, %v1938_v57, 0.0 }
 0x2ab   : > { %v1960_v30 = vadd.f32 %v1959_v15, %v1958_v58 }
 0x2ad   : > { %v1962_v47 = vadd.f32 %v1961_v45, %v1960_v30 }
 0x2af   : > { %v1964_v14 = vadd.f32 %v1963_v13, %v1962_v47 }
 0x2b1   : > { %v1966_v21 = vadd.f32 %v1965_v5, %v1964_v14 }
 0x2b3   : > { %v1968_v9 = vadd.f32 %v1967_v63, %v1966_v21 }
 0x2b5   : > { %v1970_v48 = vadd.f32 %v1969_v17, %v1968_v9 }
 0x2b7   : > { %v1972_v29 = vadd.f32 %v1971_v46, %v1970_v48 }
 0x2b9   : > { %v1974_v27 = vadd.f32 %v1973_v24, %v1972_v29 }
 0x2bb   : > { %v1976_v3 = vadd.f32 %v1975_v16, %v1974_v27 }
 0x2bd   : > { %v1978_v22 = vadd.f32 %v1977_v6, %v1976_v3 }
 0x2bf   : > { %v1980_v0 = vadd.f32 %v1979_v20, %v1978_v22 }
 0x2c1   : > { %v1982_v62 = vadd.f32 %v1981_v28, %v1980_v0 }
 0x2c3   : > { %v1984_v37 = vadd.f32 %v1983_v56, %v1982_v62 }
 0x2c5   : > { %v1986_v39 = vadd.f32 %v1985_v50, %v1984_v37 }
 0x2c7   : > { %v1988_v33 = vadd.f32 %v1987_v49, %v1986_v39 }
 0x2c9   : > { %v1990_v38 = vadd.f32 %v1989_v36, %v1988_v33 }
 0x2cb   : > { %v1992_v10 = vadd.f32 %v1991_v41, %v1990_v38 }
 0x2cd   : > { %v1994_v4 = vadd.f32 %v1993_v43, %v1992_v10 }
 0x2cf   : > { %v1996_v55 = vadd.f32 %v1995_v44, %v1994_v4 }
 0x2d1   : > { %v1998_v52 = vadd.f32 %v1997_v32, %v1996_v55 }
 0x2d3   : > { %v2000_v58 = vadd.f32 %v1999_v8, %v1998_v52 }
 0x2d5   : > { %v2002_v15 = vadd.f32 %v2001_v34, %v2000_v58 }
 0x2d7   : > { %v2003_v30 = vrot.slane %v2002_v15, 4 }
 0x2d9   : > { %v2004_v59 = vadd.f32 %v2003_v30, %v2002_v15 }
 0x2db   : > { %v2005_v54 = vrot.slane %v2004_v59, 2 }
 0x2dd   : > { %v2006_v45 = vadd.f32 %v2005_v54, %v2004_v59 }
 0x2df   : > { %v2007_v47 = vrot.slane %v2006_v45, 1 }
 0x2e1   : > { %v2008_v12 = vadd.f32 %v2007_v47, %v2006_v45 }
 0x2e3   : > { %2011 = vst.msk [vmem:[%s206_s10] sm:$0x1] %vm2009_vm0, %v2008_v12 }
 0x2e4   : > { %2473 = shalt.err (!%p2470_p9)
}
 0x2e5   : > { %s2474_s27 = scalar_lea.hbm %s3884_s14, 16  ;;  %s2478_s30 = scalar_lea.hbm %s3932_s4, 32 }
 0x2e6   : > { %p2475_p10 = scmp.ne.s32.totalorder %s3884_s14, %s2474_s27  ;;  %p2479_p13 = scmp.lt.u32.totalorder %s3884_s14, %s3932_s4 }
 0x2e7   : > { %p2480_p0 = scmp.lt.u32.totalorder %s2478_s30, %s2474_s27  ;;  %p2482_p2 = scmp.lt.u32.totalorder %s2474_s27, %s3884_s14 }
 0x2e8   : > { %p2476_p11 = pnand %p2475_p10, %p2601_p5 }
 0x2e9   : > { %p2481_p1 = por %p2480_p0, %p2479_p13 }
 0x2ea   : > { %p2477_p12 = pneg %p2476_p11 }
 0x2eb   : > { %p2483_p3 = por %p2482_p2, %p2481_p1 }
 0x2ed   : > { %p2484_p4 = pnand %p2483_p3, %p2477_p12 }
 0x2ef   : > { %2487 = shalt.err (!%p2484_p4)
}
 0x2f0   : > { %2360 = dma.vmem_to_hbm [thread:$0]  (%p2601_p5), %s3886_s11, 16, %s3884_s14, %s2054_s20  }
 0x2f1 PF: > { %p2370_p7 = scmp.ge.s32.totalorder %s2526_s18, 2  ;;  %s2102_s7 = sand.u32 1, %s2514_s15  }
 0x2f2   : > { %s2103_s9 = scalar_lea.sflag [#allocation3], %s2102_s7 }
 0x2f3   : > { %p2364_p8 = pnand %p2370_p7, %p2605_p6 }
 0x2f5   : > { %2505 = dma.done.wait (!%p2364_p8), %s2103_s9, 16  }
 0x2f6   : > { %2507 = vsyncadd (!%p2364_p8), %s2103_s9, 4294967280  ;;  %s2111_s10 = scalar_lea.sflag [#allocation5], %s2102_s7 }
 0x2f7   : > { %2509 = dma.done.wait (!%p2364_p8), %s2111_s10, 16  }
 0x2f8   : > { %2511 = vsyncadd (!%p2364_p8), %s2111_s10, 4294967280  ;;  %p18_p5 = scmp.ge.s32.totalorder %s2588_s21, 4   ;;  %s3939_s15 = smov %s2518_s16 }
 0x2f9   : > { %s3940_s16 = smov %s2522_s17  ;;  %s3941_s17 = smov %s2599_s24 }
 0x2fa   : > { %s3942_s18 = smov %s2588_s21  ;;  %20 = sbr.rel (!%p18_p5) target bundleno = 5 (0x5), region = 92 }
 0x301   :  { %2115 = vsyncpa [#allocation3], 1 }
 0x302   :  { %2117 = vsyncpa [#allocation3 + $0x1], 1 }
 0x303   :  { %2118 = vsyncpa [#allocation5], 1 }
 0x304   :  { %2120 = vsyncpa [#allocation5 + $0x1], 1 }

</bundles_post_ra>
